<compile_context>
chip_gen: v7x
topology: tpu7x:2x2x1
jax: 0.10.0
libtpu: 0.0.40
codegen_flags: <defaults>
</compile_context>

<pallas_src>
import functools

import numpy as np
import jax
import jax.numpy as jnp
from jax.experimental import pallas as pl
from jax.experimental.pallas import tpu as pltpu

WIN_SIZE = 11
WIN_SIGMA = 1.5
K1, K2 = 0.01, 0.03


def _gaussian_window(size, sigma):
    # same as pytorch_msssim._fspecial_gauss_1d
    coords = np.arange(size, dtype=np.float64) - size // 2
    g = np.exp(-(coords ** 2) / (2.0 * sigma ** 2))
    return (g / g.sum()).astype(np.float32)


def _round_up(x, m):
    return (x + m - 1) // m * m


def _band_matrix(n_in, n_out, g):
    """(n_in, n_out) matrix B with B[i, o] = g[i - o] for o <= i < o + win.
    (row-of-image) @ B == 'valid' 1-D cross-correlation, matching F.conv2d pad=0."""
    b = np.zeros((n_in, n_out), dtype=np.float32)
    win = g.shape[0]
    for o in range(n_out):
        b[o:o + win, o] = g
    return b


def _vmem_capacity_bytes():
    try:
        cap = int(getattr(pltpu.get_tpu_info(), "vmem_capacity_bytes", 0))
        if cap > 0:
            return cap
    except Exception:
        pass
    return 64 * 1024 * 1024          # conservative fallback (safe on every generation)


def _ssim_kernel(x_ref, y_ref, wmat_ref, hmat_ref, out_ref, *,
                 tbc, h_p, w, wo_p, wo, ho, data_min, data_max, filter_dtype):
    # x_ref / y_ref : (tbc, h_p, w)   raw (un-normalized) planes, H zero-padded to h_p
    # wmat_ref      : (w, wo_p)       banded Gaussian, lane (W) axis, zero-padded cols
    # hmat_ref      : (h_p, ho)       banded Gaussian, H axis (zero rows for padding)
    # out_ref       : (1, 1, tbc)     relu(per-plane mean SSIM), lane-dense
    xf = x_ref[...].astype(jnp.float32)
    yf = y_ref[...].astype(jnp.float32)
    wmat = wmat_ref[...]              # filter_dtype (bf16 by default)
    hmat = hmat_ref[...]

    def gfilter(a):
        # W-axis 'valid' filter: one (tbc*h_p, w) @ (w, wo_p) MXU matmul, f32 accum.
        a2 = a.reshape(tbc * h_p, w).astype(filter_dtype)
        t = jnp.dot(a2, wmat, preferred_element_type=jnp.float32)
        # H-axis filter: 8-aligned minor-dim transpose, then second MXU matmul.
        t = jnp.swapaxes(t.reshape(tbc, h_p, wo_p), 1, 2)        # (tbc, wo_p, h_p)
        t2 = t.reshape(tbc * wo_p, h_p).astype(filter_dtype)
        m = jnp.dot(t2, hmat, preferred_element_type=jnp.float32)
        return m.reshape(tbc, wo_p, ho)

    # Five statistic maps filtered independently (no concat copy; shared weights).
    ex = gfilter(xf)
    ey = gfilter(yf)
    exx = gfilter(xf * xf)
    eyy = gfilter(yf * yf)
    exy = gfilter(xf * yf)

    # ---- SSIM pointwise math on the small filtered maps ----
    # Normalization to [0,1] folded in as an affine correction (filter is linear,
    # weights sum to 1).
    s = 1.0 / (data_max - data_min)
    s2 = s * s
    mu1 = (ex - data_min) * s
    mu2 = (ey - data_min) * s
    # Clamp guards bf16-operand cancellation in flat regions; exact variance is >= 0.
    sigma1_sq = jnp.maximum((exx - ex * ex) * s2, 0.0)
    sigma2_sq = jnp.maximum((eyy - ey * ey) * s2, 0.0)
    sigma12 = (exy - ex * ey) * s2

    c1 = (K1 * 1.0) ** 2
    c2 = (K2 * 1.0) ** 2
    num = (2.0 * mu1 * mu2 + c1) * (2.0 * sigma12 + c2)
    den = (mu1 * mu1 + mu2 * mu2 + c1) * (sigma1_sq + sigma2_sq + c2)
    ssim_map = num * pl.reciprocal(den, approx=True)      # EUP vrcp; VALU stays free

    # Fused mean over the valid (wo, ho) window; relu for nonnegative_ssim=True.
    ho_sum = jnp.sum(ssim_map, axis=2)                    # (tbc, wo_p); ho has no padding
    plane_sum = jnp.sum(ho_sum[:, :wo], axis=1)           # drop padded wo columns
    per_plane = jnp.maximum(plane_sum * (1.0 / (wo * ho)), 0.0)
    out_ref[0, 0, :] = per_plane.astype(out_ref.dtype)    # single lane-dense row store


def ssim_loss(x, y, data_range=(-1.0, 1.0), filter_dtype=jnp.bfloat16):
    """Equivalent of SSIMLoss(data_range).forward(x, y); x, y are NCHW float
    (f32 or bf16; bf16 inputs halve the input DMA)."""
    x = jnp.asarray(x)
    y = jnp.asarray(y)
    B, C, H, W = x.shape
    assert H >= WIN_SIZE and W >= WIN_SIZE, "image must be >= win_size"
    ho = H - WIN_SIZE + 1
    wo = W - WIN_SIZE + 1
    h_p = _round_up(H, 8)          # keep in-kernel reshapes / transpose 8-aligned
    wo_p = _round_up(wo, 8)
    bc = B * C

    g = _gaussian_window(WIN_SIZE, WIN_SIGMA)
    wmat = np.zeros((W, wo_p), np.float32)
    wmat[:, :wo] = _band_matrix(W, wo, g)
    hmat = np.zeros((h_p, ho), np.float32)
    hmat[:H, :] = _band_matrix(H, ho, g)

    # ---- generation-aware VMEM sizing ----
    in_bytes = x.dtype.itemsize
    fb = np.dtype(filter_dtype).itemsize
    per_plane_bytes = (
        2 * 2 * h_p * W * in_bytes        # x & y input blocks, double-buffered
        + 2 * h_p * W * 4                 # xf, yf f32 (live across the 5 filters)
        + 2 * h_p * W * (4 + fb)          # ~2 in-flight products + their casts
        + 2 * h_p * wo_p * (8 + fb)       # ~2 in-flight t / transposed / cast temps
        + 13 * wo_p * ho * 4              # 5 filtered maps + ~8 pointwise temps
    )
    weight_bytes = 2 * (W * wo_p + h_p * ho) * fb

    vmem_cap = _vmem_capacity_bytes()
    budget = max(vmem_cap * 3 // 8 - weight_bytes, 1 << 20)   # 24 MiB v7x / 48 MiB v5e,v6e
    vmem_limit = int(vmem_cap * 3 // 4)                       # 48 MiB v7x / 96 MiB v5e,v6e

    tbc = max(1, min(int(budget // per_plane_bytes), bc))
    # Keep >= 4 grid steps (2 per v7x TensorCore) when each step still moves >= ~1 MiB,
    # so both cores stay busy and DMA/compute overlap; otherwise one big step is cheaper.
    tbc_4way = -(-bc // 4)
    if tbc_4way * 2 * h_p * W * in_bytes >= (1 << 20):
        tbc = min(tbc, tbc_4way)
    n_steps = -(-bc // tbc)
    bc_pad = n_steps * tbc

    x3 = x.reshape(bc, H, W)
    y3 = y.reshape(bc, H, W)
    if bc_pad != bc or h_p != H:      # common case (H%8==0, bc%tbc==0) pays no pad pass
        pad = ((0, bc_pad - bc), (0, h_p - H), (0, 0))
        x3 = jnp.pad(x3, pad)
        y3 = jnp.pad(y3, pad)

    kern = functools.partial(
        _ssim_kernel, tbc=tbc, h_p=h_p, w=W, wo_p=wo_p, wo=wo, ho=ho,
        data_min=float(data_range[0]), data_max=float(data_range[1]),
        filter_dtype=filter_dtype)

    per_plane = pl.pallas_call(
        kern,
        out_shape=jax.ShapeDtypeStruct((n_steps, 1, tbc), jnp.float32),
        grid_spec=pltpu.PrefetchScalarGridSpec(
            num_scalar_prefetch=0,
            grid=(n_steps,),
            in_specs=[
                pl.BlockSpec((tbc, h_p, W), lambda i: (i, 0, 0)),
                pl.BlockSpec((tbc, h_p, W), lambda i: (i, 0, 0)),
                pl.BlockSpec((W, wo_p), lambda i: (0, 0)),   # shared weights, resident
                pl.BlockSpec((h_p, ho), lambda i: (0, 0)),
            ],
            out_specs=pl.BlockSpec((1, 1, tbc), lambda i: (i, 0, 0)),
        ),
        compiler_params=pltpu.CompilerParams(
            dimension_semantics=("parallel",),
            vmem_limit_bytes=vmem_limit),
    )(x3, y3, jnp.asarray(wmat, filter_dtype), jnp.asarray(hmat, filter_dtype))

    # Final mean over valid planes and 1 - ssim in the wrapper (relu already applied).
    valid = per_plane.reshape(-1)[:bc]
    return 1.0 - jnp.mean(valid)


def _ssim_loss_ref(x, y, data_range=(-1.0, 1.0)):
    """Pure-JAX f32 reference (pytorch_msssim semantics) for a sanity check."""
    dmin, dmax = data_range
    xn = (jnp.asarray(x, jnp.float32) - dmin) / (dmax - dmin)
    yn = (jnp.asarray(y, jnp.float32) - dmin) / (dmax - dmin)
    B, C, H, W = xn.shape
    ho, wo = H - WIN_SIZE + 1, W - WIN_SIZE + 1
    g = _gaussian_window(WIN_SIZE, WIN_SIGMA)
    wb = jnp.asarray(_band_matrix(W, wo, g))
    hb = jnp.asarray(_band_matrix(H, ho, g))

    def filt(a):
        a = a.reshape(B * C, H, W)
        t = jnp.einsum('phw,wo->pho', a, wb)
        return jnp.einsum('pho,hk->pko', t, hb)     # (B*C, ho, wo)

    ex, ey = filt(xn), filt(yn)
    exx, eyy, exy = filt(xn * xn), filt(yn * yn), filt(xn * yn)
    s1 = exx - ex * ex
    s2 = eyy - ey * ey
    s12 = exy - ex * ey
    c1, c2 = K1 ** 2, K2 ** 2
    sm = ((2 * ex * ey + c1) * (2 * s12 + c2)) / ((ex * ex + ey * ey + c1) * (s1 + s2 + c2))
    per = jnp.maximum(sm.reshape(B * C, -1).mean(-1), 0.0)
    return 1.0 - per.mean()


if __name__ == "__main__":
    key = jax.random.PRNGKey(0)
    kx, ky = jax.random.split(key)
    B, C, H, W = 2, 4, 16, 16
    x = jax.random.uniform(kx, (B, C, H, W), jnp.float32, minval=-1.0, maxval=1.0)
    y = jax.random.uniform(ky, (B, C, H, W), jnp.float32, minval=-1.0, maxval=1.0)

    loss = jax.block_until_ready(ssim_loss(x, y))
    ref = jax.block_until_ready(_ssim_loss_ref(x, y))
    assert loss.shape == () and bool(jnp.isfinite(loss))
    assert abs(float(loss) - float(ref)) < 5e-2, (float(loss), float(ref))
    print("KERNEL_OK")
</pallas_src>

<mosaic_0001>
module attributes {stable_mosaic.version = 11 : i64} {
  func.func @_ssim_kernel(%arg0: i32, %arg1: memref<8x16x16xf32, #tpu.memory_space<vmem>>, %arg2: memref<8x16x16xf32, #tpu.memory_space<vmem>>, %arg3: memref<16x8xbf16, #tpu.memory_space<vmem>>, %arg4: memref<16x6xbf16, #tpu.memory_space<vmem>>, %arg5: memref<1x1x8xf32, #tpu.memory_space<vmem>>) attributes {dimension_semantics = [#tpu.dimension_semantics<parallel>], iteration_bounds = array<i64: 1>, scalar_prefetch = 0 : i64, scratch_operands = 0 : i64, tpu.core_type = #tpu.core_type<tc>, window_params = [{transform_indices = @transform_0, window_bounds = array<i64: 8, 16, 16>}, {transform_indices = @transform_1, window_bounds = array<i64: 8, 16, 16>}, {pipeline_mode = #tpu.pipeline_mode<synchronous>, transform_indices = @transform_2, window_bounds = array<i64: 16, 8>}, {pipeline_mode = #tpu.pipeline_mode<synchronous>, transform_indices = @transform_3, window_bounds = array<i64: 16, 6>}, {transform_indices = @transform_4, window_bounds = array<i64: 1, 1, 8>}]} {
    %c0 = arith.constant 0 : index
    %c0_0 = arith.constant 0 : index
    %c0_1 = arith.constant 0 : index
    %0 = vector.load %arg1[%c0, %c0_0, %c0_1] : memref<8x16x16xf32, #tpu.memory_space<vmem>>, vector<8x16x16xf32>
    %c0_2 = arith.constant 0 : index
    %c0_3 = arith.constant 0 : index
    %c0_4 = arith.constant 0 : index
    %1 = vector.load %arg2[%c0_2, %c0_3, %c0_4] : memref<8x16x16xf32, #tpu.memory_space<vmem>>, vector<8x16x16xf32>
    %c0_5 = arith.constant 0 : index
    %c0_6 = arith.constant 0 : index
    %2 = vector.load %arg3[%c0_5, %c0_6] : memref<16x8xbf16, #tpu.memory_space<vmem>>, vector<16x8xbf16>
    %c0_7 = arith.constant 0 : index
    %c0_8 = arith.constant 0 : index
    %3 = vector.load %arg4[%c0_7, %c0_8] : memref<16x6xbf16, #tpu.memory_space<vmem>>, vector<16x6xbf16>
    %4 = vector.shape_cast %0 : vector<8x16x16xf32> to vector<128x16xf32>
    %5 = arith.truncf %4 : vector<128x16xf32> to vector<128x16xbf16>
    %cst = arith.constant dense<0.000000e+00> : vector<128x8xf32>
    %6 = tpu.matmul %5, %2, %cst {dimension_numbers = #tpu.dot_dimension_numbers<[1], [0], [0], [1], [0, 0, 1, 1], [], []>} : vector<128x16xbf16>, vector<16x8xbf16>, vector<128x8xf32> -> vector<128x8xf32>
    %7 = vector.shape_cast %6 : vector<128x8xf32> to vector<8x16x8xf32>
    %8 = tpu.transpose %7, [0, 2, 1] : vector<8x16x8xf32> -> vector<8x8x16xf32>
    %9 = vector.shape_cast %8 : vector<8x8x16xf32> to vector<64x16xf32>
    %10 = arith.truncf %9 : vector<64x16xf32> to vector<64x16xbf16>
    %cst_9 = arith.constant dense<0.000000e+00> : vector<64x6xf32>
    %11 = tpu.matmul %10, %3, %cst_9 {dimension_numbers = #tpu.dot_dimension_numbers<[1], [0], [0], [1], [0, 0, 1, 1], [], []>} : vector<64x16xbf16>, vector<16x6xbf16>, vector<64x6xf32> -> vector<64x6xf32>
    %12 = vector.shape_cast %11 : vector<64x6xf32> to vector<8x8x6xf32>
    %13 = vector.shape_cast %1 : vector<8x16x16xf32> to vector<128x16xf32>
    %14 = arith.truncf %13 : vector<128x16xf32> to vector<128x16xbf16>
    %cst_10 = arith.constant dense<0.000000e+00> : vector<128x8xf32>
    %15 = tpu.matmul %14, %2, %cst_10 {dimension_numbers = #tpu.dot_dimension_numbers<[1], [0], [0], [1], [0, 0, 1, 1], [], []>} : vector<128x16xbf16>, vector<16x8xbf16>, vector<128x8xf32> -> vector<128x8xf32>
    %16 = vector.shape_cast %15 : vector<128x8xf32> to vector<8x16x8xf32>
    %17 = tpu.transpose %16, [0, 2, 1] : vector<8x16x8xf32> -> vector<8x8x16xf32>
    %18 = vector.shape_cast %17 : vector<8x8x16xf32> to vector<64x16xf32>
    %19 = arith.truncf %18 : vector<64x16xf32> to vector<64x16xbf16>
    %cst_11 = arith.constant dense<0.000000e+00> : vector<64x6xf32>
    %20 = tpu.matmul %19, %3, %cst_11 {dimension_numbers = #tpu.dot_dimension_numbers<[1], [0], [0], [1], [0, 0, 1, 1], [], []>} : vector<64x16xbf16>, vector<16x6xbf16>, vector<64x6xf32> -> vector<64x6xf32>
    %21 = vector.shape_cast %20 : vector<64x6xf32> to vector<8x8x6xf32>
    %22 = arith.mulf %0, %0 : vector<8x16x16xf32>
    %23 = vector.shape_cast %22 : vector<8x16x16xf32> to vector<128x16xf32>
    %24 = arith.truncf %23 : vector<128x16xf32> to vector<128x16xbf16>
    %cst_12 = arith.constant dense<0.000000e+00> : vector<128x8xf32>
    %25 = tpu.matmul %24, %2, %cst_12 {dimension_numbers = #tpu.dot_dimension_numbers<[1], [0], [0], [1], [0, 0, 1, 1], [], []>} : vector<128x16xbf16>, vector<16x8xbf16>, vector<128x8xf32> -> vector<128x8xf32>
    %26 = vector.shape_cast %25 : vector<128x8xf32> to vector<8x16x8xf32>
    %27 = tpu.transpose %26, [0, 2, 1] : vector<8x16x8xf32> -> vector<8x8x16xf32>
    %28 = vector.shape_cast %27 : vector<8x8x16xf32> to vector<64x16xf32>
    %29 = arith.truncf %28 : vector<64x16xf32> to vector<64x16xbf16>
    %cst_13 = arith.constant dense<0.000000e+00> : vector<64x6xf32>
    %30 = tpu.matmul %29, %3, %cst_13 {dimension_numbers = #tpu.dot_dimension_numbers<[1], [0], [0], [1], [0, 0, 1, 1], [], []>} : vector<64x16xbf16>, vector<16x6xbf16>, vector<64x6xf32> -> vector<64x6xf32>
    %31 = vector.shape_cast %30 : vector<64x6xf32> to vector<8x8x6xf32>
    %32 = arith.mulf %1, %1 : vector<8x16x16xf32>
    %33 = vector.shape_cast %32 : vector<8x16x16xf32> to vector<128x16xf32>
    %34 = arith.truncf %33 : vector<128x16xf32> to vector<128x16xbf16>
    %cst_14 = arith.constant dense<0.000000e+00> : vector<128x8xf32>
    %35 = tpu.matmul %34, %2, %cst_14 {dimension_numbers = #tpu.dot_dimension_numbers<[1], [0], [0], [1], [0, 0, 1, 1], [], []>} : vector<128x16xbf16>, vector<16x8xbf16>, vector<128x8xf32> -> vector<128x8xf32>
    %36 = vector.shape_cast %35 : vector<128x8xf32> to vector<8x16x8xf32>
    %37 = tpu.transpose %36, [0, 2, 1] : vector<8x16x8xf32> -> vector<8x8x16xf32>
    %38 = vector.shape_cast %37 : vector<8x8x16xf32> to vector<64x16xf32>
    %39 = arith.truncf %38 : vector<64x16xf32> to vector<64x16xbf16>
    %cst_15 = arith.constant dense<0.000000e+00> : vector<64x6xf32>
    %40 = tpu.matmul %39, %3, %cst_15 {dimension_numbers = #tpu.dot_dimension_numbers<[1], [0], [0], [1], [0, 0, 1, 1], [], []>} : vector<64x16xbf16>, vector<16x6xbf16>, vector<64x6xf32> -> vector<64x6xf32>
    %41 = vector.shape_cast %40 : vector<64x6xf32> to vector<8x8x6xf32>
    %42 = arith.mulf %0, %1 : vector<8x16x16xf32>
    %43 = vector.shape_cast %42 : vector<8x16x16xf32> to vector<128x16xf32>
    %44 = arith.truncf %43 : vector<128x16xf32> to vector<128x16xbf16>
    %cst_16 = arith.constant dense<0.000000e+00> : vector<128x8xf32>
    %45 = tpu.matmul %44, %2, %cst_16 {dimension_numbers = #tpu.dot_dimension_numbers<[1], [0], [0], [1], [0, 0, 1, 1], [], []>} : vector<128x16xbf16>, vector<16x8xbf16>, vector<128x8xf32> -> vector<128x8xf32>
    %46 = vector.shape_cast %45 : vector<128x8xf32> to vector<8x16x8xf32>
    %47 = tpu.transpose %46, [0, 2, 1] : vector<8x16x8xf32> -> vector<8x8x16xf32>
    %48 = vector.shape_cast %47 : vector<8x8x16xf32> to vector<64x16xf32>
    %49 = arith.truncf %48 : vector<64x16xf32> to vector<64x16xbf16>
    %cst_17 = arith.constant dense<0.000000e+00> : vector<64x6xf32>
    %50 = tpu.matmul %49, %3, %cst_17 {dimension_numbers = #tpu.dot_dimension_numbers<[1], [0], [0], [1], [0, 0, 1, 1], [], []>} : vector<64x16xbf16>, vector<16x6xbf16>, vector<64x6xf32> -> vector<64x6xf32>
    %51 = vector.shape_cast %50 : vector<64x6xf32> to vector<8x8x6xf32>
    %cst_18 = arith.constant -1.000000e+00 : f32
    %52 = vector.broadcast %cst_18 : f32 to vector<8x8x6xf32>
    %53 = arith.subf %12, %52 : vector<8x8x6xf32>
    %cst_19 = arith.constant 5.000000e-01 : f32
    %54 = vector.broadcast %cst_19 : f32 to vector<8x8x6xf32>
    %55 = arith.mulf %53, %54 : vector<8x8x6xf32>
    %cst_20 = arith.constant -1.000000e+00 : f32
    %56 = vector.broadcast %cst_20 : f32 to vector<8x8x6xf32>
    %57 = arith.subf %21, %56 : vector<8x8x6xf32>
    %cst_21 = arith.constant 5.000000e-01 : f32
    %58 = vector.broadcast %cst_21 : f32 to vector<8x8x6xf32>
    %59 = arith.mulf %57, %58 : vector<8x8x6xf32>
    %60 = arith.mulf %12, %12 : vector<8x8x6xf32>
    %61 = arith.subf %31, %60 : vector<8x8x6xf32>
    %cst_22 = arith.constant 2.500000e-01 : f32
    %62 = vector.broadcast %cst_22 : f32 to vector<8x8x6xf32>
    %63 = arith.mulf %61, %62 : vector<8x8x6xf32>
    %cst_23 = arith.constant 0.000000e+00 : f32
    %64 = vector.broadcast %cst_23 : f32 to vector<8x8x6xf32>
    %65 = arith.maximumf %63, %64 : vector<8x8x6xf32>
    %66 = arith.mulf %21, %21 : vector<8x8x6xf32>
    %67 = arith.subf %41, %66 : vector<8x8x6xf32>
    %cst_24 = arith.constant 2.500000e-01 : f32
    %68 = vector.broadcast %cst_24 : f32 to vector<8x8x6xf32>
    %69 = arith.mulf %67, %68 : vector<8x8x6xf32>
    %cst_25 = arith.constant 0.000000e+00 : f32
    %70 = vector.broadcast %cst_25 : f32 to vector<8x8x6xf32>
    %71 = arith.maximumf %69, %70 : vector<8x8x6xf32>
    %72 = arith.mulf %12, %21 : vector<8x8x6xf32>
    %73 = arith.subf %51, %72 : vector<8x8x6xf32>
    %cst_26 = arith.constant 2.500000e-01 : f32
    %74 = vector.broadcast %cst_26 : f32 to vector<8x8x6xf32>
    %75 = arith.mulf %73, %74 : vector<8x8x6xf32>
    %cst_27 = arith.constant 2.000000e+00 : f32
    %76 = vector.broadcast %cst_27 : f32 to vector<8x8x6xf32>
    %77 = arith.mulf %76, %55 : vector<8x8x6xf32>
    %78 = arith.mulf %77, %59 : vector<8x8x6xf32>
    %cst_28 = arith.constant 9.99999974E-5 : f32
    %79 = vector.broadcast %cst_28 : f32 to vector<8x8x6xf32>
    %80 = arith.addf %78, %79 : vector<8x8x6xf32>
    %cst_29 = arith.constant 2.000000e+00 : f32
    %81 = vector.broadcast %cst_29 : f32 to vector<8x8x6xf32>
    %82 = arith.mulf %81, %75 : vector<8x8x6xf32>
    %cst_30 = arith.constant 8.99999984E-4 : f32
    %83 = vector.broadcast %cst_30 : f32 to vector<8x8x6xf32>
    %84 = arith.addf %82, %83 : vector<8x8x6xf32>
    %85 = arith.mulf %80, %84 : vector<8x8x6xf32>
    %86 = arith.mulf %55, %55 : vector<8x8x6xf32>
    %87 = arith.mulf %59, %59 : vector<8x8x6xf32>
    %88 = arith.addf %86, %87 : vector<8x8x6xf32>
    %cst_31 = arith.constant 9.99999974E-5 : f32
    %89 = vector.broadcast %cst_31 : f32 to vector<8x8x6xf32>
    %90 = arith.addf %88, %89 : vector<8x8x6xf32>
    %91 = arith.addf %65, %71 : vector<8x8x6xf32>
    %cst_32 = arith.constant 8.99999984E-4 : f32
    %92 = vector.broadcast %cst_32 : f32 to vector<8x8x6xf32>
    %93 = arith.addf %91, %92 : vector<8x8x6xf32>
    %94 = arith.mulf %90, %93 : vector<8x8x6xf32>
    %95 = tpu.reciprocal %94 {approx = true} : vector<8x8x6xf32> -> vector<8x8x6xf32>
    %96 = arith.mulf %85, %95 : vector<8x8x6xf32>
    %cst_33 = arith.constant dense<0.000000e+00> : vector<8x8xf32>
    %97 = vector.multi_reduction <add>, %96, %cst_33 [2] : vector<8x8x6xf32> to vector<8x8xf32>
    %98 = vector.extract_strided_slice %97 {offsets = [0, 0], sizes = [8, 6], strides = [1, 1]} : vector<8x8xf32> to vector<8x6xf32>
    %cst_34 = arith.constant dense<0.000000e+00> : vector<8xf32>
    %99 = vector.multi_reduction <add>, %98, %cst_34 [1] : vector<8x6xf32> to vector<8xf32>
    %cst_35 = arith.constant 0.027777778 : f32
    %100 = vector.broadcast %cst_35 : f32 to vector<8xf32>
    %101 = arith.mulf %99, %100 : vector<8xf32>
    %cst_36 = arith.constant 0.000000e+00 : f32
    %102 = vector.broadcast %cst_36 : f32 to vector<8xf32>
    %103 = arith.maximumf %101, %102 : vector<8xf32>
    %c0_37 = arith.constant 0 : index
    %c0_38 = arith.constant 0 : index
    %c0_39 = arith.constant 0 : index
    %104 = vector.load %arg5[%c0_37, %c0_38, %c0_39] : memref<1x1x8xf32, #tpu.memory_space<vmem>>, vector<1x1x8xf32>
    %105 = vector.shape_cast %104 : vector<1x1x8xf32> to vector<8xf32>
    %106 = vector.shape_cast %103 : vector<8xf32> to vector<1x1x8xf32>
    tpu.vector_store %arg5[%c0_37, %c0_38, %c0_39], %106 {strides = array<i32>} : memref<1x1x8xf32, #tpu.memory_space<vmem>>, vector<1x1x8xf32>,
    return
  }
  func.func @transform_0(%arg0: i32) -> (i32, i32, i32) {
    %c0_i32 = arith.constant 0 : i32
    %c0_i32_0 = arith.constant 0 : i32
    %c0_i32_1 = arith.constant 0 : i32
    return %arg0, %c0_i32, %c0_i32_0 : i32, i32, i32
  }
  func.func @transform_1(%arg0: i32) -> (i32, i32, i32) {
    %c0_i32 = arith.constant 0 : i32
    %c0_i32_0 = arith.constant 0 : i32
    %c0_i32_1 = arith.constant 0 : i32
    return %arg0, %c0_i32, %c0_i32_0 : i32, i32, i32
  }
  func.func @transform_2(%arg0: i32) -> (i32, i32) {
    %c0_i32 = arith.constant 0 : i32
    %c0_i32_0 = arith.constant 0 : i32
    %c0_i32_1 = arith.constant 0 : i32
    return %c0_i32, %c0_i32_0 : i32, i32
  }
  func.func @transform_3(%arg0: i32) -> (i32, i32) {
    %c0_i32 = arith.constant 0 : i32
    %c0_i32_0 = arith.constant 0 : i32
    %c0_i32_1 = arith.constant 0 : i32
    return %c0_i32, %c0_i32_0 : i32, i32
  }
  func.func @transform_4(%arg0: i32) -> (i32, i32, i32) {
    %c0_i32 = arith.constant 0 : i32
    %c0_i32_0 = arith.constant 0 : i32
    %c0_i32_1 = arith.constant 0 : i32
    return %arg0, %c0_i32, %c0_i32_0 : i32, i32, i32
  }
}

</mosaic_0001>

<bundles_post_ra>
// kernel: tpu_custom_call.1
= control target key start
LH: loop header
LB: loop body
LE: loop exit
PB: predicated region body
PF: predicated region fallthrough
CT: control target
= control target key end

     0   :  { %9 = vsyncpa [#allocation3], 0  ;;  %s4020_s0 = inlined_call_operand.hbm [shape: f32[8,16,16], index: 0, kind: input, shape index: {}]   ;;  %s4021_s1 = inlined_call_operand.hbm [shape: f32[8,16,16], index: 1, kind: input, shape index: {}]   ;;  %s4022_s2 = inlined_call_operand.vmem [shape: bf16[16,8], index: 2, kind: input, shape index: {}]   ;;  %s4023_s3 = inlined_call_operand.vmem [shape: bf16[16,6], index: 3, kind: input, shape index: {}]   ;;  %s4024_s4 = inlined_call_operand.hbm [shape: f32[1,1,8], index: 4, kind: output, shape index: {}]  }
   0x1   :  { %10 = vsyncpa [#allocation6], 0 }
   0x2   :  { %11 = vsyncpa [#allocation4], 0  ;;  %s3394_s15 = smov [#allocation2]   ;;  %s3322_s19 = scalar_lea.hbm %s4020_s0, 2048 }
   0x3   :  { %s17_s16 = sshll.u32 %s3394_s15, 4  ;;  %p3323_p0 = scmp.ne.s32.totalorder %s4020_s0, %s3322_s19  ;;  %s18_s16 = int_to_ptr.vmem [resolvable:$true] %s17_s16 }
   0x4   :  { %p3326_p1 = scmp.lt.u32.totalorder %s3322_s19, %s4020_s0 }
   0x6   :  { %p3328_p2 = pnand %p3326_p1, %p3323_p0 }
   0x8   :  { %3331 = shalt.err (!%p3328_p2)
}
   0x9   :  { %s3332_s24 = scalar_lea.vmem %s18_s16, 2048  ;;  %p3337_p4 = scmp.lt.s32.totalorder %s18_s16, %s18_s16 }
   0xa   :  { %p3333_p3 = scmp.ne.s32.totalorder %s18_s16, %s3332_s24  ;;  %p3338_p5 = scmp.lt.s32.totalorder %s3332_s24, %s3332_s24 }
   0xc   :  { %p3339_p6 = por %p3338_p5, %p3337_p4 }
   0xe   :  { %p3340_p7 = pnand %p3339_p6, %p3333_p3 }
  0x10   :  { %3343 = shalt.err (!%p3340_p7)
}
  0x11   :  { %s3395_s25 = smov 128   ;;  %s3396_s26 = smov 8  }
  0x12   :  { %23 = dma.hbm_to_vmem [thread:$0]  %s4020_s0, 2048, %s18_s16, [#allocation3], %s3395_s25, %s3395_s25, %s3396_s26  }
  0x13   :  { %s3397_s29 = smov [#allocation5]   ;;  %s3344_s7 = scalar_lea.hbm %s4021_s1, 2048 }
  0x14   :  { %s29_s30 = sshll.u32 %s3397_s29, 4  ;;  %p3345_p8 = scmp.ne.s32.totalorder %s4021_s1, %s3344_s7  ;;  %s30_s30 = int_to_ptr.vmem [resolvable:$true] %s29_s30 }
  0x15   :  { %p3348_p9 = scmp.lt.u32.totalorder %s3344_s7, %s4021_s1 }
  0x17   :  { %p3350_p10 = pnand %p3348_p9, %p3345_p8 }
  0x19   :  { %3353 = shalt.err (!%p3350_p10)
}
  0x1a   :  { %s3354_s12 = scalar_lea.vmem %s30_s30, 2048  ;;  %p3359_p12 = scmp.lt.s32.totalorder %s30_s30, %s30_s30 }
  0x1b   :  { %p3355_p11 = scmp.ne.s32.totalorder %s30_s30, %s3354_s12  ;;  %p3360_p13 = scmp.lt.s32.totalorder %s3354_s12, %s3354_s12 }
  0x1d   :  { %p3361_p0 = por %p3360_p13, %p3359_p12 }
  0x1f   :  { %p3362_p1 = pnand %p3361_p0, %p3355_p11 }
  0x21   :  { %3365 = shalt.err (!%p3362_p1)
}
  0x22   :  { %35 = dma.hbm_to_vmem [thread:$0]  %s4021_s1, 2048, %s30_s30, [#allocation6], %s3395_s25, %s3395_s25, %s3396_s26  }
  0x23   :  { %3388 = dma.done.wait [#allocation3], 2048  }
  0x24   :  { %3389 = vsyncadd [#allocation3], 4294965248 }
  0x25   :  { %3390 = dma.done.wait [#allocation6], 2048  }
  0x26   :  { %3391 = vsyncadd [#allocation6], 4294965248  ;;  %v3451_v0 = vld [vmem:[%s4022_s2] sm:$0xff]   ;;  %v3455_v2 = vld [vmem:[#allocation2 + $0x8] sm:$0xff]  ;;  %vm97_vm0 = vcmask 130048   ;;  %vm2714_vm1 = vcmask 48128  }
  0x27   :  { %v3453_v1 = vld [vmem:[#allocation2] sm:$0xff]  ;;  %2973 = vmatprep.subr.bf16.mxu0 %v3451_v0  ;;  %v49_v4 = vld [vmem:[#allocation2 + $0x10] sm:$0xff]  ;;  %v50_v5 = vld [vmem:[#allocation2 + $0x18] sm:$0xff]  ;;  %3113 = vmatprep.subr.bf16.mxu1 %v3451_v0  ;;  %vm2781_vm2 = vcmask 1041409   ;;  %vm2783_vm3 = vcmask 1042434   ;;  %vm2785_vm4 = vcmask 1043459  }
  0x28   :  { %v83_v3 = vpack.c.bf16 %v3455_v2, %v3453_v1  ;;  %2974 = vmatpush3.bf16.msra.mxu0 %v3451_v0  ;;  %v3461_v6 = vld [vmem:[#allocation5 + $0x10] sm:$0xff]  ;;  %v84_v7 = vpack.c.bf16 %v50_v5, %v49_v4  ;;  %v3463_v8 = vmul.f32 %v49_v4, %v49_v4  ;;  %v3465_v9 = vmul.f32 %v50_v5, %v50_v5  ;;  %v3467_v10 = vld [vmem:[#allocation2 + $0x20] sm:$0xff]  ;;  %v3470_v11 = vld [vmem:[#allocation5 + $0x18] sm:$0xff] }
  0x29   :  { %v3473_v12 = vmul.f32 %v3461_v6, %v49_v4  ;;  %v3475_v13 = vld [vmem:[#allocation2 + $0x28] sm:$0xff]  ;;  %v3480_v15 = vmul.f32 %v3470_v11, %v50_v5  ;;  %v3485_v17 = vld [vmem:[#allocation2 + $0x60] sm:$0xff]  ;;  %3114 = vmatpush3.bf16.msra.mxu1 %v3451_v0  ;;  %v3493_v20 = vld [vmem:[#allocation2 + $0x70] sm:$0xff]  ;;  %vm2787_vm5 = vcmask 1044484   ;;  %vm2789_vm6 = vcmask 1045509  }
  0x2a   :  { %2975 = vmatprep.mubr.msk.bf16.mxu0 %vm97_vm0, %v83_v3  ;;  %v1045_v14 = vpack.c.bf16 %v3465_v9, %v3463_v8  ;;  %v85_v16 = vpack.c.bf16 %v3475_v13, %v3467_v10  ;;  %v3487_v18 = vld [vmem:[#allocation2 + $0x68] sm:$0xff]  ;;  %v3495_v21 = vld [vmem:[#allocation2 + $0x78] sm:$0xff]  ;;  %v3500_v23 = vld [vmem:[#allocation2 + $0x30] sm:$0xff]  ;;  %vm2791_vm7 = vcmask 1046534   ;;  %vm2793_vm8 = vcmask 1047559  }
  0x2b   :  { %2976 = vmatmul.mubr.msk.bf16.vlgmr.msra.gmra.mrb[0].mxu0 %vm97_vm0, %v84_v7  ;;  %v89_v19 = vpack.c.bf16 %v3487_v18, %v3485_v17  ;;  %v3502_v24 = vld [vmem:[#allocation2 + $0x38] sm:$0xff]  ;;  %v90_v25 = vpack.c.bf16 %v3495_v21, %v3493_v20  ;;  %v3506_v26 = vld [vmem:[#allocation2 + $0x40] sm:$0xff]  ;;  %v3509_v27 = vld [vmem:[#allocation2 + $0x48] sm:$0xff]  ;;  %vm2807_vm9 = vcmask 57344  }
  0x2c   :  { %2979 = vmatprep.mubr.msk.bf16.mxu0 %vm97_vm0, %v85_v16  ;;  %v86_v28 = vpack.c.bf16 %v3502_v24, %v3500_v23  ;;  %v87_v29 = vpack.c.bf16 %v3509_v27, %v3506_v26  ;;  %v3518_v30 = vld [vmem:[#allocation2 + $0x50] sm:$0xff]  ;;  %v3520_v31 = vld [vmem:[#allocation2 + $0x58] sm:$0xff]  ;;  %v3528_v33 = vld [vmem:[%s4023_s3] sm:$0xff]   ;;  %s3398_s3 = smov [#allocation7]  }
  0x2d   :  { %2987 = vmatprep.mubr.msk.bf16.mxu1 %vm97_vm0, %v89_v19  ;;  %4033 = vst [vmem:[#allocation11_spill] sm:$0xff] %v3520_v31  ;;  %v88_v32 = vpack.c.bf16 %v3520_v31, %v3518_v30  ;;  %2991 = vmatprep.subr.bf16.mxu1 %v3528_v33  ;;  %v3540_v5 = vld [vmem:[#allocation5] sm:$0xff]  ;;  %v3542_v7 = vld [vmem:[#allocation5 + $0x8] sm:$0xff]  ;;  %s2815_s16 = sshll.u32 %s3398_s3, 4  ;;  %s2816_s16 = int_to_ptr.vmem [resolvable:$true] %s2815_s16 }
  0x2e   :  { %2988 = vmatmul.mubr.msk.bf16.vlgmr.msra.gmra.mrb[0].mxu1 %vm97_vm0, %v90_v25  ;;  %3019 = vmatprep.subr.bf16.mxu0 %v3528_v33  ;;  %s3366_s17 = scalar_lea.vmem %s2816_s16, 16  ;;  %s3370_s18 = scalar_lea.vmem %s2816_s16, 32 }
  0x2f   :  { %2992 = vmatpush3.bf16.msra.mxu1 %v3528_v33  ;;  %3020 = vmatpush3.bf16.msra.mxu0 %v3528_v33  ;;  %p3367_p2 = scmp.ne.s32.totalorder %s2816_s16, %s3366_s17  ;;  %p3371_p3 = scmp.lt.s32.totalorder %s2816_s16, %s2816_s16 }
  0x30   :  { %3001 = vmatprep.subr.bf16.mxu1 %v3451_v0  ;;  %3029 = vmatprep.subr.bf16.mxu0 %v3451_v0  ;;  %p3372_p4 = scmp.lt.s32.totalorder %s3370_s18, %s3366_s17 }
  0x32   :  { %p3373_p5 = por %p3372_p4, %p3371_p3 }
  0x33   :  { %2980 = vmatmul.mubr.msk.bf16.gmra.mrb[4].mxu0 %vm97_vm0, %v86_v28 }
  0x34   :  { %2983 = vmatprep.mubr.msk.bf16.mxu0 %vm97_vm0, %v87_v29  ;;  %p3374_p6 = pnand %p3373_p5, %p3367_p2 }
  0x3b   :  { %2984 = vmatmul.mubr.msk.bf16.gmra.mrb[8].mxu0 %vm97_vm0, %v88_v32 }
  0xfe   :  { %v2977_v34 = vpop.f32.mrb[0].mxu0 }
  0xff   :  { %v156_v35 = vpop.f32.mrb[1].mxu0 }
 0x100   :  { %v2978_v36 = vpop.f32.mrb[2].mxu0  ;;  %v3121_v37 = vpack.i.bf16 %v2977_v34, %v156_v35  ;;  %v562_v35 = vpack.c.bf16 %v3542_v7, %v3540_v5 }
 0x101   :  { %v159_v38 = vpop.f32.mrb[3].mxu0  ;;  %v2989_v39 = vpop.f32.mrb[0].mxu1 }
 0x102   :  { %v3123_v40 = vpack.i.bf16 %v2978_v36, %v159_v38  ;;  %3122 = vxpose.xlu0.b32.start [1/2] (short) (narrow) %v3121_v37, 8  ;;  %v204_v41 = vpop.f32.mrb[1].mxu1  ;;  %v3549_v37 = vld [vmem:[#allocation5 + $0x20] sm:$0xff]  ;;  %v3551_v38 = vld [vmem:[#allocation5 + $0x28] sm:$0xff] }
 0x103   :  { %v3148_v42 = vpack.i.bf16 %v2989_v39, %v204_v41  ;;  %v2990_v43 = vpop.f32.mrb[2].mxu1  ;;  %v563_v39 = vpack.c.bf16 %v3470_v11, %v3461_v6  ;;  %v3559_v41 = vld [vmem:[#allocation5 + $0x30] sm:$0xff] }
 0x104   :  { %v207_v44 = vpop.f32.mrb[3].mxu1 }
 0x105   :  { %v3150_v45 = vpack.i.bf16 %v2990_v43, %v207_v44  ;;  %v3564_v43 = vld [vmem:[#allocation5 + $0x40] sm:$0xff]  ;;  %v3566_v44 = vld [vmem:[#allocation5 + $0x48] sm:$0xff] }
 0x106   :  { %3124 = vxpose.xlu0.b32.end [2/2] (short) (narrow) %v3123_v40, 8  ;;  %v2981_v46 = vpop.f32.mrb[4].mxu0  ;;  %v564_v40 = vpack.c.bf16 %v3551_v38, %v3549_v37 }
 0x107   :  { %v172_v47 = vpop.f32.mrb[5].mxu0 }
 0x108   :  { %v2982_v48 = vpop.f32.mrb[6].mxu0  ;;  %v3130_v49 = vpack.i.bf16 %v2981_v46, %v172_v47  ;;  %v566_v46 = vpack.c.bf16 %v3566_v44, %v3564_v43  ;;  %v3575_v47 = vld [vmem:[#allocation5 + $0x50] sm:$0xff] }
 0x109   :  { %v175_v50 = vpop.f32.mrb[7].mxu0 }
 0x10a   :  { %v3132_v51 = vpack.i.bf16 %v2982_v48, %v175_v50  ;;  %3131 = vxpose.xlu1.b32.start [1/2] (short) (narrow) %v3130_v49, 8  ;;  %v3577_v48 = vld [vmem:[#allocation5 + $0x58] sm:$0xff]  ;;  %v3579_v49 = vld [vmem:[#allocation5 + $0x60] sm:$0xff]  ;;  %v3581_v50 = vld [vmem:[#allocation5 + $0x68] sm:$0xff] }
 0x10e   :  { %3133 = vxpose.xlu1.b32.end [2/2] (short) (narrow) %v3132_v51, 8  ;;  %v2985_v52 = vpop.f32.mrb[8].mxu0  ;;  %v567_v51 = vpack.c.bf16 %v3577_v48, %v3575_v47 }
 0x10f   :  { %v188_v53 = vpop.f32.mrb[9].mxu0 }
 0x110   :  { %v3139_v54 = vpack.i.bf16 %v2985_v52, %v188_v53  ;;  %v2986_v55 = vpop.f32.mrb[10].mxu0  ;;  %v568_v52 = vpack.c.bf16 %v3581_v50, %v3579_v49  ;;  %v3589_v53 = vld [vmem:[#allocation5 + $0x70] sm:$0xff] }
 0x111   :  { %v191_v56 = vpop.f32.mrb[11].mxu0 }
 0x112   :  { %v3141_v57 = vpack.i.bf16 %v2986_v55, %v191_v56  ;;  %3149 = vxpose.xlu1.b32.start [1/2] (short) (narrow) %v3148_v42, 8  ;;  %3140 = vxpose.xlu0.b32.start [1/2] (short) (narrow) %v3139_v54, 8  ;;  %v3561_v42 = vld [vmem:[#allocation5 + $0x38] sm:$0xff] }
 0x113   :  { %v3591_v54 = vld [vmem:[#allocation5 + $0x78] sm:$0xff] }
 0x114   :  { %v569_v55 = vpack.c.bf16 %v3591_v54, %v3589_v53 }
 0x116   :  { %3151 = vxpose.xlu1.b32.end [2/2] (short) (narrow) %v3150_v45, 8  ;;  %3142 = vxpose.xlu0.b32.end [2/2] (short) (narrow) %v3141_v57, 8  ;;  %v565_v45 = vpack.c.bf16 %v3561_v42, %v3559_v41 }
 0x182   :  { %v3125_v58 = vpop.trf.xlu0 }
 0x183   :  { %v3129_v59 = vunpack.i.h.bf16 %v3125_v58  ;;  %v3126_v60 = vunpack.i.l.bf16 %v3125_v58 }
 0x185   :  { %v475_v61 = vpack.c.bf16 %v3129_v59, %v3126_v60 }
 0x187   :  { %2993 = vmatprep.mubr.msk.bf16.mxu1 %vm97_vm0, %v475_v61 }
 0x18a   :  { %v3134_v62 = vpop.trf.xlu1 }
 0x18b   :  { %v3138_v63 = vunpack.i.h.bf16 %v3134_v62  ;;  %v3135_v3 = vunpack.i.l.bf16 %v3134_v62 }
 0x18d   :  { %v476_v4 = vpack.c.bf16 %v3138_v63, %v3135_v3 }
 0x18f   :  { %2994 = vmatmul.mubr.msk.bf16.vlgmr.msra.gmra.mrb[4].mxu1 %vm97_vm0, %v476_v4 }
 0x190   :  { %3002 = vmatpush3.bf16.msra.mxu1 %v3451_v0 }
 0x191   :  { %3047 = vmatprep.subr.bf16.mxu1 %v3528_v33 }
 0x192   :  { %v3143_v16 = vpop.trf.xlu0  ;;  %v3152_v19 = vpop.trf.xlu1 }
 0x193   :  { %v3147_v25 = vunpack.i.h.bf16 %v3143_v16  ;;  %v3144_v28 = vunpack.i.l.bf16 %v3143_v16  ;;  %v3156_v29 = vunpack.i.h.bf16 %v3152_v19  ;;  %v3153_v32 = vunpack.i.l.bf16 %v3152_v19 }
 0x195   :  { %v477_v34 = vpack.c.bf16 %v3147_v25, %v3144_v28  ;;  %v478_v36 = vpack.c.bf16 %v3156_v29, %v3153_v32 }
 0x197   :  { %2997 = vmatprep.mubr.msk.bf16.mxu1 %vm97_vm0, %v477_v34 }
 0x198   :  { %2998 = vmatmul.mubr.msk.bf16.gmra.mrb[8].mxu1 %vm97_vm0, %v478_v36 }
 0x199   :  { %3003 = vmatprep.mubr.msk.bf16.mxu1 %vm97_vm0, %v562_v35 }
 0x1a0   :  { %3004 = vmatmul.mubr.msk.bf16.vlgmr.msra.gmra.mrb[12].mxu1 %vm97_vm0, %v563_v39 }
 0x1a1   :  { %3007 = vmatprep.mubr.msk.bf16.mxu1 %vm97_vm0, %v564_v40  ;;  %3048 = vmatpush3.bf16.msra.mxu1 %v3528_v33 }
 0x1a2   :  { %3057 = vmatprep.subr.bf16.mxu1 %v3451_v0 }
 0x1a8   :  { %3008 = vmatmul.mubr.msk.bf16.gmra.mrb[16].mxu1 %vm97_vm0, %v565_v45 }
 0x1a9   :  { %3011 = vmatprep.mubr.msk.bf16.mxu1 %vm97_vm0, %v566_v46 }
 0x1b0   :  { %3012 = vmatmul.mubr.msk.bf16.gmra.mrb[20].mxu1 %vm97_vm0, %v567_v51 }
 0x1b1   :  { %3015 = vmatprep.mubr.msk.bf16.mxu1 %vm97_vm0, %v568_v52 }
 0x1b8   :  { %3016 = vmatmul.mubr.msk.bf16.gmra.mrb[24].mxu1 %vm97_vm0, %v569_v55 }
 0x262   :  { %v3596_v56 = vpop.f32.mrb[4].mxu1 }
 0x263   :  { %v3598_v57 = vpop.f32.mrb[5].mxu1 }
 0x264   :  { %v3600_v58 = vpop.f32.mrb[6].mxu1 }
 0x265   :  { %v3602_v59 = vpop.f32.mrb[7].mxu1 }
 0x26b   :  { %v3604_v60 = vpop.f32.mrb[8].mxu1 }
 0x26c   :  { %v3606_v61 = vpop.f32.mrb[9].mxu1 }
 0x26d   :  { %v3608_v62 = vpop.f32.mrb[10].mxu1 }
 0x26e   :  { %v3610_v63 = vpop.f32.mrb[11].mxu1 }
 0x273   :  { %v3005_v3 = vpop.f32.mrb[12].mxu1 }
 0x274   :  { %v628_v4 = vpop.f32.mrb[13].mxu1 }
 0x275   :  { %v3157_v16 = vpack.i.bf16 %v3005_v3, %v628_v4  ;;  %v3006_v19 = vpop.f32.mrb[14].mxu1 }
 0x276   :  { %v631_v25 = vpop.f32.mrb[15].mxu1 }
 0x277   :  { %v3159_v28 = vpack.i.bf16 %v3006_v19, %v631_v25  ;;  %3158 = vxpose.xlu0.b32.start [1/2] (short) (narrow) %v3157_v16, 8 }
 0x27b   :  { %3160 = vxpose.xlu0.b32.end [2/2] (short) (narrow) %v3159_v28, 8  ;;  %v3009_v29 = vpop.f32.mrb[16].mxu1 }
 0x27c   :  { %v644_v32 = vpop.f32.mrb[17].mxu1 }
 0x27d   :  { %v3166_v34 = vpack.i.bf16 %v3009_v29, %v644_v32  ;;  %v3010_v35 = vpop.f32.mrb[18].mxu1  ;;  %v1028_v29 = vmul.f32 %v3453_v1, %v3453_v1  ;;  %v1029_v32 = vmul.f32 %v3455_v2, %v3455_v2 }
 0x27e   :  { %v647_v36 = vpop.f32.mrb[19].mxu1 }
 0x27f   :  { %v3168_v39 = vpack.i.bf16 %v3010_v35, %v647_v36  ;;  %3167 = vxpose.xlu1.b32.start [1/2] (short) (narrow) %v3166_v34, 8  ;;  %v1044_v34 = vpack.c.bf16 %v1029_v32, %v1028_v29  ;;  %v1040_v35 = vmul.f32 %v3485_v17, %v3485_v17  ;;  %v1041_v36 = vmul.f32 %v3487_v18, %v3487_v18 }
 0x283   :  { %3169 = vxpose.xlu1.b32.end [2/2] (short) (narrow) %v3168_v39, 8  ;;  %v3013_v40 = vpop.f32.mrb[20].mxu1  ;;  %v1050_v39 = vpack.c.bf16 %v1041_v36, %v1040_v35 }
 0x284   :  { %v660_v45 = vpop.f32.mrb[21].mxu1 }
 0x285   :  { %v3175_v46 = vpack.i.bf16 %v3013_v40, %v660_v45  ;;  %v3014_v51 = vpop.f32.mrb[22].mxu1 }
 0x286   :  { %v663_v52 = vpop.f32.mrb[23].mxu1 }
 0x287   :  { %v3177_v55 = vpack.i.bf16 %v3014_v51, %v663_v52  ;;  %3176 = vxpose.xlu0.b32.start [1/2] (short) (narrow) %v3175_v46, 8 }
 0x28b   :  { %3178 = vxpose.xlu0.b32.end [2/2] (short) (narrow) %v3177_v55, 8  ;;  %v3017_v3 = vpop.f32.mrb[24].mxu1 }
 0x28c   :  { %v676_v4 = vpop.f32.mrb[25].mxu1 }
 0x28d   :  { %v3184_v16 = vpack.i.bf16 %v3017_v3, %v676_v4  ;;  %v3018_v19 = vpop.f32.mrb[26].mxu1 }
 0x28e   :  { %v679_v25 = vpop.f32.mrb[27].mxu1 }
 0x28f   :  { %v3186_v28 = vpack.i.bf16 %v3018_v19, %v679_v25  ;;  %3185 = vxpose.xlu1.b32.start [1/2] (short) (narrow) %v3184_v16, 8 }
 0x293   :  { %3187 = vxpose.xlu1.b32.end [2/2] (short) (narrow) %v3186_v28, 8 }
 0x2f7   :  { %v3161_v40 = vpop.trf.xlu0 }
 0x2f8   :  { %v3165_v45 = vunpack.i.h.bf16 %v3161_v40  ;;  %v3162_v46 = vunpack.i.l.bf16 %v3161_v40  ;;  %v1032_v40 = vmul.f32 %v3467_v10, %v3467_v10  ;;  %v1036_v10 = vmul.f32 %v3506_v26, %v3506_v26 }
 0x2fa   :  { %v947_v51 = vpack.c.bf16 %v3165_v45, %v3162_v46  ;;  %v1033_v45 = vmul.f32 %v3475_v13, %v3475_v13 }
 0x2fc   :  { %3021 = vmatprep.mubr.msk.bf16.mxu0 %vm97_vm0, %v947_v51  ;;  %v1046_v46 = vpack.c.bf16 %v1033_v45, %v1032_v40  ;;  %v1034_v51 = vmul.f32 %v3500_v23, %v3500_v23 }
 0x2ff   :  { %v3170_v52 = vpop.trf.xlu1 }
 0x300   :  { %v3174_v55 = vunpack.i.h.bf16 %v3170_v52  ;;  %v3171_v3 = vunpack.i.l.bf16 %v3170_v52  ;;  %v1035_v52 = vmul.f32 %v3502_v24, %v3502_v24 }
 0x302   :  { %v948_v4 = vpack.c.bf16 %v3174_v55, %v3171_v3  ;;  %v1047_v8 = vpack.c.bf16 %v1035_v52, %v1034_v51  ;;  %v1039_v55 = vmul.f32 %v3520_v31, %v3520_v31 }
 0x304   :  { %3022 = vmatmul.mubr.msk.bf16.vlgmr.msra.gmra.mrb[12].mxu0 %vm97_vm0, %v948_v4  ;;  %v1042_v4 = vmul.f32 %v3493_v20, %v3493_v20 }
 0x305   :  { %3030 = vmatpush3.bf16.msra.mxu0 %v3451_v0 }
 0x306   :  { %3075 = vmatprep.subr.bf16.mxu0 %v3528_v33 }
 0x307   :  { %v3179_v16 = vpop.trf.xlu0 }
 0x308   :  { %v3183_v19 = vunpack.i.h.bf16 %v3179_v16  ;;  %v3180_v25 = vunpack.i.l.bf16 %v3179_v16  ;;  %v1043_v16 = vmul.f32 %v3495_v21, %v3495_v21 }
 0x30a   :  { %v949_v28 = vpack.c.bf16 %v3183_v19, %v3180_v25  ;;  %v1051_v19 = vpack.c.bf16 %v1043_v16, %v1042_v4  ;;  %v2889_v25 = vadd.f32 1.0, %v3596_v56 }
 0x30c   :  { %3025 = vmatprep.mubr.msk.bf16.mxu0 %vm97_vm0, %v949_v28  ;;  %v2887_v28 = vadd.f32 1.0, %v3598_v57 }
 0x30f   :  { %v3188_v29 = vpop.trf.xlu1 }
 0x310   :  { %v3192_v32 = vunpack.i.h.bf16 %v3188_v29  ;;  %v3189_v35 = vunpack.i.l.bf16 %v3188_v29  ;;  %v2484_v29 = vmul.f32 0.5, %v2889_v25 }
 0x312   :  { %v950_v36 = vpack.c.bf16 %v3192_v32, %v3189_v35  ;;  %v2890_v32 = vadd.f32 1.0, %v3600_v58  ;;  %v2888_v35 = vadd.f32 1.0, %v3602_v59  ;;  %v2596_v20 = vmul.f32 2.0, %v2484_v29 }
 0x313   :  { %v2644_v51 = vmul.f32 %v2484_v29, %v2484_v29 }
 0x314   :  { %3026 = vmatmul.mubr.msk.bf16.gmra.mrb[16].mxu0 %vm97_vm0, %v950_v36  ;;  %v2482_v36 = vmul.f32 0.5, %v2887_v28  ;;  %v2485_v45 = vmul.f32 0.5, %v2890_v32  ;;  %v2483_v52 = vmul.f32 0.5, %v2888_v35 }
 0x315   :  { %3031 = vmatprep.mubr.msk.bf16.mxu0 %vm97_vm0, %v1044_v34  ;;  %v1037_v34 = vmul.f32 %v3509_v27, %v3509_v27 }
 0x316   :  { %v2642_v16 = vmul.f32 %v2482_v36, %v2482_v36  ;;  %v2597_v29 = vmul.f32 2.0, %v2485_v45  ;;  %v2595_v22 = vmul.f32 2.0, %v2483_v52 }
 0x317   :  { %v1048_v9 = vpack.c.bf16 %v1037_v34, %v1036_v10 }
 0x31c   :  { %3032 = vmatmul.mubr.msk.bf16.vlgmr.msra.gmra.mrb[20].mxu0 %vm97_vm0, %v1045_v14  ;;  %v1038_v14 = vmul.f32 %v3518_v30, %v3518_v30 }
 0x31d   :  { %3035 = vmatprep.mubr.msk.bf16.mxu0 %vm97_vm0, %v1046_v46  ;;  %3076 = vmatpush3.bf16.msra.mxu0 %v3528_v33 }
 0x31e   :  { %3085 = vmatprep.subr.bf16.mxu0 %v3451_v0  ;;  %v1049_v3 = vpack.c.bf16 %v1039_v55, %v1038_v14 }
 0x324   :  { %3036 = vmatmul.mubr.msk.bf16.gmra.mrb[24].mxu0 %vm97_vm0, %v1047_v8 }
 0x325   :  { %3039 = vmatprep.mubr.msk.bf16.mxu0 %vm97_vm0, %v1048_v9  ;;  %v2594_v9 = vmul.f32 2.0, %v2482_v36 }
 0x32c   :  { %3040 = vmatmul.mubr.msk.bf16.gmra.mrb[28].mxu0 %vm97_vm0, %v1049_v3 }
 0x32d   :  { %3043 = vmatprep.mubr.msk.bf16.mxu0 %vm97_vm0, %v1050_v39 }
 0x334   :  { %3044 = vmatmul.mubr.msk.bf16.gmra.mrb[32].mxu0 %vm97_vm0, %v1051_v19 }
 0x3d7   :  { %v3663_v40 = vpop.f32.mrb[12].mxu0 }
 0x3d8   :  { %4034 = vst [vmem:[#allocation12_spill] sm:$0xff] %v3663_v40  ;;  %v2897_v21 = vadd.f32 1.0, %v3663_v40  ;;  %v3666_v39 = vpop.f32.mrb[13].mxu0  ;;  %v3670_v46 = vmul.f32 %v3663_v40, %v3596_v56  ;;  %v2643_v40 = vmul.f32 %v2483_v52, %v2483_v52 }
 0x3d9   :  { %4035 = vst [vmem:[#allocation13_spill] sm:$0xff] %v3666_v39  ;;  %v2895_v10 = vadd.f32 1.0, %v3666_v39  ;;  %v3673_v34 = vpop.f32.mrb[14].mxu0  ;;  %v3677_v8 = vmul.f32 %v3666_v39, %v3598_v57 }
 0x3da   :  { %4036 = vst [vmem:[#allocation14_spill] sm:$0xff] %v3670_v46  ;;  %4037 = vst [vmem:[#allocation15_spill] sm:$0xff] %v3673_v34  ;;  %v2500_v14 = vmul.f32 0.5, %v2897_v21  ;;  %v2898_v55 = vadd.f32 1.0, %v3673_v34  ;;  %v3680_v3 = vpop.f32.mrb[15].mxu0  ;;  %v3684_v4 = vmul.f32 %v3673_v34, %v3600_v58  ;;  %v2645_v34 = vmul.f32 %v2485_v45, %v2485_v45 }
 0x3db   :  { %4038 = vst [vmem:[#allocation16_spill] sm:$0xff] %v3677_v8  ;;  %4039 = vst [vmem:[#allocation17_spill] sm:$0xff] %v3680_v3  ;;  %v2498_v19 = vmul.f32 0.5, %v2895_v10  ;;  %v2896_v25 = vadd.f32 1.0, %v3680_v3  ;;  %v3689_v28 = vmul.f32 %v3680_v3, %v3602_v59 }
 0x3dc   :  { %4040 = vst [vmem:[#allocation18_spill] sm:$0xff] %v3684_v4  ;;  %v3691_v32 = vmul.f32 %v2596_v20, %v2500_v14  ;;  %v2652_v35 = vmul.f32 %v2500_v14, %v2500_v14  ;;  %v2501_v21 = vmul.f32 0.5, %v2898_v55  ;;  %v2893_v14 = vadd.f32 1.0, %v3604_v60 }
 0x3dd   :  { %4041 = vst [vmem:[#allocation19_spill] sm:$0xff] %v3689_v28  ;;  %v3693_v8 = vmul.f32 %v2594_v9, %v2498_v19  ;;  %v2650_v46 = vmul.f32 %v2498_v19, %v2498_v19  ;;  %v2499_v39 = vmul.f32 0.5, %v2896_v25  ;;  %v2891_v19 = vadd.f32 1.0, %v3606_v61 }
 0x3de   :  { %4042 = vst [vmem:[#allocation20_spill] sm:$0xff] %v3691_v32  ;;  %v3695_v4 = vadd.f32 %v2652_v35, %v2644_v51  ;;  %v3697_v36 = vmul.f32 %v2597_v29, %v2501_v21  ;;  %v2653_v10 = vmul.f32 %v2501_v21, %v2501_v21  ;;  %v2488_v45 = vmul.f32 0.5, %v2893_v14 }
 0x3df   :  { %4043 = vst [vmem:[#allocation21_spill] sm:$0xff] %v3693_v8  ;;  %v3699_v31 = vadd.f32 %v2650_v46, %v2642_v16  ;;  %v3701_v28 = vmul.f32 %v2595_v22, %v2499_v39  ;;  %v2651_v20 = vmul.f32 %v2499_v39, %v2499_v39  ;;  %v2894_v51 = vadd.f32 1.0, %v3608_v62 }
 0x3e0   :  { %4044 = vst [vmem:[#allocation22_spill] sm:$0xff] %v3695_v4  ;;  %4045 = vst [vmem:[#allocation23_spill] sm:$0xff] %v3697_v36  ;;  %v3704_v55 = vadd.f32 %v2653_v10, %v2645_v34  ;;  %v2892_v25 = vadd.f32 1.0, %v3610_v63  ;;  %v2486_v29 = vmul.f32 0.5, %v2891_v19  ;;  %v2600_v46 = vmul.f32 2.0, %v2488_v45 }
 0x3e1   :  { %4046 = vst [vmem:[#allocation24_spill] sm:$0xff] %v3699_v31  ;;  %4047 = vst [vmem:[#allocation25_spill] sm:$0xff] %v3701_v28  ;;  %v3706_v9 = vadd.f32 %v2651_v20, %v2643_v40  ;;  %v2489_v22 = vmul.f32 0.5, %v2894_v51  ;;  %v2648_v34 = vmul.f32 %v2488_v45, %v2488_v45 }
 0x3e2   :  { %4048 = vst [vmem:[#allocation26_spill] sm:$0xff] %v3704_v55  ;;  %v2487_v35 = vmul.f32 0.5, %v2892_v25  ;;  %v2598_v14 = vmul.f32 2.0, %v2486_v29  ;;  %v2646_v45 = vmul.f32 %v2486_v29, %v2486_v29 }
 0x3e3   :  { %4049 = vst [vmem:[#allocation27_spill] sm:$0xff] %v3706_v9  ;;  %v2601_v32 = vmul.f32 2.0, %v2489_v22 }
 0x3e4   :  { %v2647_v4 = vmul.f32 %v2487_v35, %v2487_v35 }
 0x3e7   :  { %v3711_v52 = vpop.f32.mrb[16].mxu0 }
 0x3e8   :  { %4050 = vst [vmem:[#allocation28_spill] sm:$0xff] %v3711_v52  ;;  %v2901_v39 = vadd.f32 1.0, %v3711_v52  ;;  %v3714_v16 = vpop.f32.mrb[17].mxu0  ;;  %v3718_v40 = vmul.f32 %v3711_v52, %v3604_v60  ;;  %v2599_v52 = vmul.f32 2.0, %v2487_v35 }
 0x3e9   :  { %4051 = vst [vmem:[#allocation29_spill] sm:$0xff] %v3714_v16  ;;  %v2899_v21 = vadd.f32 1.0, %v3714_v16  ;;  %v3721_v10 = vpop.f32.mrb[18].mxu0  ;;  %v3725_v20 = vmul.f32 %v3714_v16, %v3606_v61 }
 0x3ea   :  { %4052 = vst [vmem:[#allocation30_spill] sm:$0xff] %v3718_v40  ;;  %4053 = vst [vmem:[#allocation31_spill] sm:$0xff] %v3721_v10  ;;  %v2504_v19 = vmul.f32 0.5, %v2901_v39  ;;  %v2902_v51 = vadd.f32 1.0, %v3721_v10  ;;  %v3728_v28 = vpop.f32.mrb[19].mxu0  ;;  %v3732_v36 = vmul.f32 %v3721_v10, %v3608_v62  ;;  %v2649_v10 = vmul.f32 %v2489_v22, %v2489_v22 }
 0x3eb   :  { %4054 = vst [vmem:[#allocation32_spill] sm:$0xff] %v3725_v20  ;;  %v2502_v25 = vmul.f32 0.5, %v2899_v21  ;;  %v2900_v40 = vadd.f32 1.0, %v3728_v28  ;;  %v3737_v8 = vmul.f32 %v3728_v28, %v3610_v63 }
 0x3ec   :  { %4055 = vst [vmem:[#allocation33_spill] sm:$0xff] %v3732_v36  ;;  %v3739_v20 = vmul.f32 %v2600_v46, %v2504_v19  ;;  %v2656_v39 = vmul.f32 %v2504_v19, %v2504_v19  ;;  %v2505_v16 = vmul.f32 0.5, %v2902_v51 }
 0x3ed   :  { %4056 = vst [vmem:[#allocation34_spill] sm:$0xff] %v3737_v8  ;;  %v3741_v9 = vmul.f32 %v2598_v14, %v2502_v25  ;;  %v2654_v55 = vmul.f32 %v2502_v25, %v2502_v25  ;;  %v2503_v31 = vmul.f32 0.5, %v2900_v40 }
 0x3ee   :  { %4057 = vst [vmem:[#allocation35_spill] sm:$0xff] %v3739_v20  ;;  %v3743_v36 = vadd.f32 %v2656_v39, %v2648_v34  ;;  %v3745_v29 = vmul.f32 %v2601_v32, %v2505_v16  ;;  %v2657_v21 = vmul.f32 %v2505_v16, %v2505_v16 }
 0x3ef   :  { %4058 = vst [vmem:[#allocation36_spill] sm:$0xff] %v3741_v9  ;;  %v3747_v3 = vadd.f32 %v2654_v55, %v2646_v45  ;;  %v3749_v8 = vmul.f32 %v2599_v52, %v2503_v31  ;;  %v2655_v46 = vmul.f32 %v2503_v31, %v2503_v31  ;;  %v3033_v20 = vpop.f32.mrb[20].mxu0 }
 0x3f0   :  { %4059 = vst [vmem:[#allocation37_spill] sm:$0xff] %v3745_v29  ;;  %v3751_v19 = vadd.f32 %v2657_v21, %v2649_v10  ;;  %v1110_v51 = vpop.f32.mrb[21].mxu0 }
 0x3f1   :  { %4060 = vst [vmem:[#allocation38_spill] sm:$0xff] %v3749_v8  ;;  %v3753_v14 = vadd.f32 %v2655_v46, %v2647_v4  ;;  %v3193_v25 = vpack.i.bf16 %v3033_v20, %v1110_v51  ;;  %v3034_v40 = vpop.f32.mrb[22].mxu0 }
 0x3f2   :  { %4061 = vst [vmem:[#allocation39_spill] sm:$0xff] %v3751_v19  ;;  %v1113_v22 = vpop.f32.mrb[23].mxu0 }
 0x3f3   :  { %4062 = vst [vmem:[#allocation40_spill] sm:$0xff] %v3753_v14  ;;  %v3195_v34 = vpack.i.bf16 %v3034_v40, %v1113_v22  ;;  %3194 = vxpose.xlu0.b32.start [1/2] (short) (narrow) %v3193_v25, 8 }
 0x3f7   :  { %3196 = vxpose.xlu0.b32.end [2/2] (short) (narrow) %v3195_v34, 8  ;;  %v3037_v32 = vpop.f32.mrb[24].mxu0 }
 0x3f8   :  { %v1126_v16 = vpop.f32.mrb[25].mxu0 }
 0x3f9   :  { %v3202_v35 = vpack.i.bf16 %v3037_v32, %v1126_v16  ;;  %v3038_v55 = vpop.f32.mrb[26].mxu0  ;;  %v1512_v32 = vmul.f32 %v3461_v6, %v3461_v6  ;;  %v1513_v16 = vmul.f32 %v3470_v11, %v3470_v11 }
 0x3fa   :  { %v1129_v45 = vpop.f32.mrb[27].mxu0 }
 0x3fb   :  { %v3204_v52 = vpack.i.bf16 %v3038_v55, %v1129_v45  ;;  %3203 = vxpose.xlu1.b32.start [1/2] (short) (narrow) %v3202_v35, 8  ;;  %v1527_v35 = vpack.c.bf16 %v1513_v16, %v1512_v32 }
 0x3ff   :  { %3205 = vxpose.xlu1.b32.end [2/2] (short) (narrow) %v3204_v52, 8  ;;  %v3041_v31 = vpop.f32.mrb[28].mxu0 }
 0x400   :  { %v1142_v10 = vpop.f32.mrb[29].mxu0 }
 0x401   :  { %v3211_v39 = vpack.i.bf16 %v3041_v31, %v1142_v10  ;;  %v3042_v21 = vpop.f32.mrb[30].mxu0 }
 0x402   :  { %v1145_v4 = vpop.f32.mrb[31].mxu0 }
 0x403   :  { %v3213_v46 = vpack.i.bf16 %v3042_v21, %v1145_v4  ;;  %3212 = vxpose.xlu0.b32.start [1/2] (short) (narrow) %v3211_v39, 8 }
 0x407   :  { %3214 = vxpose.xlu0.b32.end [2/2] (short) (narrow) %v3213_v46, 8  ;;  %v3045_v20 = vpop.f32.mrb[32].mxu0 }
 0x408   :  { %v1158_v51 = vpop.f32.mrb[33].mxu0 }
 0x409   :  { %v3220_v25 = vpack.i.bf16 %v3045_v20, %v1158_v51  ;;  %v3046_v40 = vpop.f32.mrb[34].mxu0  ;;  %v1510_v51 = vmul.f32 %v3540_v5, %v3540_v5 }
 0x40a   :  { %v1161_v22 = vpop.f32.mrb[35].mxu0 }
 0x40b   :  { %v3222_v34 = vpack.i.bf16 %v3046_v40, %v1161_v22  ;;  %3221 = vxpose.xlu1.b32.start [1/2] (short) (narrow) %v3220_v25, 8  ;;  %v1511_v25 = vmul.f32 %v3542_v7, %v3542_v7 }
 0x40d   :  { %v1526_v32 = vpack.c.bf16 %v1511_v25, %v1510_v51  ;;  %v1524_v25 = vmul.f32 %v3589_v53, %v3589_v53 }
 0x40f   :  { %3223 = vxpose.xlu1.b32.end [2/2] (short) (narrow) %v3222_v34, 8 }
 0x473   :  { %v3197_v55 = vpop.trf.xlu0 }
 0x474   :  { %v3201_v45 = vunpack.i.h.bf16 %v3197_v55  ;;  %v3198_v52 = vunpack.i.l.bf16 %v3197_v55  ;;  %v1514_v55 = vmul.f32 %v3549_v37, %v3549_v37 }
 0x476   :  { %v1429_v31 = vpack.c.bf16 %v3201_v45, %v3198_v52  ;;  %v1515_v45 = vmul.f32 %v3551_v38, %v3551_v38 }
 0x478   :  { %3049 = vmatprep.mubr.msk.bf16.mxu1 %vm97_vm0, %v1429_v31  ;;  %v1528_v52 = vpack.c.bf16 %v1515_v45, %v1514_v55  ;;  %v1516_v31 = vmul.f32 %v3559_v41, %v3559_v41 }
 0x47b   :  { %v3206_v10 = vpop.trf.xlu1 }
 0x47c   :  { %v3210_v39 = vunpack.i.h.bf16 %v3206_v10  ;;  %v3207_v21 = vunpack.i.l.bf16 %v3206_v10  ;;  %v1517_v10 = vmul.f32 %v3561_v42, %v3561_v42 }
 0x47e   :  { %v1430_v4 = vpack.c.bf16 %v3210_v39, %v3207_v21  ;;  %v1518_v39 = vmul.f32 %v3564_v43, %v3564_v43  ;;  %v1519_v21 = vmul.f32 %v3566_v44, %v3566_v44 }
 0x480   :  { %3050 = vmatmul.mubr.msk.bf16.vlgmr.msra.gmra.mrb[28].mxu1 %vm97_vm0, %v1430_v4  ;;  %v1529_v4 = vpack.c.bf16 %v1517_v10, %v1516_v31  ;;  %v3826_v10 = vmul.f32 %v3602_v59, %v3602_v59 }
 0x481   :  { %3058 = vmatpush3.bf16.msra.mxu1 %v3451_v0 }
 0x482   :  { %3103 = vmatprep.subr.bf16.mxu1 %v3528_v33 }
 0x483   :  { %v3215_v6 = vpop.trf.xlu0 }
 0x484   :  { %v3219_v11 = vunpack.i.h.bf16 %v3215_v6  ;;  %v3216_v46 = vunpack.i.l.bf16 %v3215_v6  ;;  %v1530_v6 = vpack.c.bf16 %v1519_v21, %v1518_v39 }
 0x486   :  { %v1431_v20 = vpack.c.bf16 %v3219_v11, %v3216_v46  ;;  %v1521_v11 = vmul.f32 %v3577_v48, %v3577_v48  ;;  %v1522_v46 = vmul.f32 %v3579_v49, %v3579_v49 }
 0x488   :  { %3053 = vmatprep.mubr.msk.bf16.mxu1 %vm97_vm0, %v1431_v20  ;;  %v1523_v20 = vmul.f32 %v3581_v50, %v3581_v50 }
 0x48b   :  { %v3224_v40 = vpop.trf.xlu1 }
 0x48c   :  { %v3228_v22 = vunpack.i.h.bf16 %v3224_v40  ;;  %v3225_v34 = vunpack.i.l.bf16 %v3224_v40  ;;  %v1525_v40 = vmul.f32 %v3591_v54, %v3591_v54 }
 0x48e   :  { %v1432_v16 = vpack.c.bf16 %v3228_v22, %v3225_v34  ;;  %v1533_v22 = vpack.c.bf16 %v1525_v40, %v1524_v25  ;;  %v3804_v34 = vmul.f32 %v3596_v56, %v3596_v56 }
 0x490   :  { %3054 = vmatmul.mubr.msk.bf16.gmra.mrb[32].mxu1 %vm97_vm0, %v1432_v16  ;;  %v3810_v16 = vmul.f32 %v3598_v57, %v3598_v57 }
 0x491   :  { %3059 = vmatprep.mubr.msk.bf16.mxu1 %vm97_vm0, %v1526_v32 }
 0x498   :  { %3060 = vmatmul.mubr.msk.bf16.vlgmr.msra.gmra.mrb[36].mxu1 %vm97_vm0, %v1527_v35  ;;  %v1520_v35 = vmul.f32 %v3575_v47, %v3575_v47 }
 0x499   :  { %3063 = vmatprep.mubr.msk.bf16.mxu1 %vm97_vm0, %v1528_v52  ;;  %3104 = vmatpush3.bf16.msra.mxu1 %v3528_v33  ;;  %v1532_v33 = vpack.c.bf16 %v1523_v20, %v1522_v46  ;;  %v3818_v52 = vmul.f32 %v3600_v58, %v3600_v58  ;;  %v3836_v58 = vmul.f32 %v3604_v60, %v3604_v60 }
 0x49a   :  { %v1531_v51 = vpack.c.bf16 %v1521_v11, %v1520_v35  ;;  %v3850_v11 = vmul.f32 %v3608_v62, %v3608_v62  ;;  %v3858_v20 = vmul.f32 %v3610_v63, %v3610_v63 }
 0x4a0   :  { %3064 = vmatmul.mubr.msk.bf16.gmra.mrb[40].mxu1 %vm97_vm0, %v1529_v4 }
 0x4a1   :  { %3067 = vmatprep.mubr.msk.bf16.mxu1 %vm97_vm0, %v1530_v6  ;;  %v3842_v6 = vmul.f32 %v3606_v61, %v3606_v61 }
 0x4a8   :  { %3068 = vmatmul.mubr.msk.bf16.gmra.mrb[44].mxu1 %vm97_vm0, %v1531_v51 }
 0x4a9   :  { %3071 = vmatprep.mubr.msk.bf16.mxu1 %vm97_vm0, %v1532_v33 }
 0x4b0   :  { %3072 = vmatmul.mubr.msk.bf16.gmra.mrb[48].mxu1 %vm97_vm0, %v1533_v22 }
 0x553   :  { %v3806_v32 = vpop.f32.mrb[28].mxu1 }
 0x554   :  { %v3814_v45 = vpop.f32.mrb[29].mxu1 }
 0x555   :  { %v3822_v56 = vpop.f32.mrb[30].mxu1 }
 0x556   :  { %v3830_v39 = vpop.f32.mrb[31].mxu1 }
 0x563   :  { %v3838_v4 = vpop.f32.mrb[32].mxu1 }
 0x564   :  { %v3846_v35 = vpop.f32.mrb[33].mxu1 }
 0x565   :  { %v3854_v60 = vpop.f32.mrb[34].mxu1 }
 0x566   :  { %v3862_v51 = vpop.f32.mrb[35].mxu1 }
 0x56b   :  { %v3061_v25 = vpop.f32.mrb[36].mxu1 }
 0x56c   :  { %v1592_v62 = vpop.f32.mrb[37].mxu1 }
 0x56d   :  { %v3229_v40 = vpack.i.bf16 %v3061_v25, %v1592_v62  ;;  %v3062_v22 = vpop.f32.mrb[38].mxu1 }
 0x56e   :  { %v1595_v59 = vpop.f32.mrb[39].mxu1 }
 0x56f   :  { %v3231_v46 = vpack.i.bf16 %v3062_v22, %v1595_v59  ;;  %3230 = vxpose.xlu0.b32.start [1/2] (short) (narrow) %v3229_v40, 8 }
 0x573   :  { %3232 = vxpose.xlu0.b32.end [2/2] (short) (narrow) %v3231_v46, 8  ;;  %v3065_v21 = vpop.f32.mrb[40].mxu1 }
 0x574   :  { %v1608_v57 = vpop.f32.mrb[41].mxu1 }
 0x575   :  { %v3238_v63 = vpack.i.bf16 %v3065_v21, %v1608_v57  ;;  %v3066_v31 = vpop.f32.mrb[42].mxu1 }
 0x576   :  { %v1611_v55 = vpop.f32.mrb[43].mxu1 }
 0x577   :  { %v3240_v8 = vpack.i.bf16 %v3066_v31, %v1611_v55  ;;  %3239 = vxpose.xlu1.b32.start [1/2] (short) (narrow) %v3238_v63, 8  ;;  %v1992_v55 = vmul.f32 %v3540_v5, %v3453_v1 }
 0x57b   :  { %3241 = vxpose.xlu1.b32.end [2/2] (short) (narrow) %v3240_v8, 8  ;;  %v3069_v61 = vpop.f32.mrb[44].mxu1  ;;  %v1993_v8 = vmul.f32 %v3542_v7, %v3455_v2 }
 0x57c   :  { %v1624_v29 = vpop.f32.mrb[45].mxu1 }
 0x57d   :  { %v3247_v9 = vpack.i.bf16 %v3069_v61, %v1624_v29  ;;  %v3070_v33 = vpop.f32.mrb[46].mxu1  ;;  %v2008_v29 = vpack.c.bf16 %v1993_v8, %v1992_v55  ;;  %v1998_v55 = vmul.f32 %v3559_v41, %v3500_v23  ;;  %v1999_v8 = vmul.f32 %v3561_v42, %v3502_v24  ;;  %v3320_v41 = vld [vmem:[#allocation2 + $0x70] sm:$0xff]  ;;  %v3321_v42 = vld [vmem:[#allocation2 + $0x78] sm:$0xff] }
 0x57e   :  { %v1627_v14 = vpop.f32.mrb[47].mxu1 }
 0x57f   :  { %v3249_v19 = vpack.i.bf16 %v3070_v33, %v1627_v14  ;;  %3248 = vxpose.xlu0.b32.start [1/2] (short) (narrow) %v3247_v9, 8  ;;  %v2004_v14 = vmul.f32 %v3579_v49, %v3485_v17  ;;  %v2005_v9 = vmul.f32 %v3581_v50, %v3487_v18 }
 0x583   :  { %3250 = vxpose.xlu0.b32.end [2/2] (short) (narrow) %v3249_v19, 8  ;;  %v3073_v25 = vpop.f32.mrb[48].mxu1  ;;  %v2014_v19 = vpack.c.bf16 %v2005_v9, %v2004_v14  ;;  %v4067_v9 = vsub.f32 %v3806_v32, %v3804_v34 }
 0x584   :  { %v1640_v59 = vpop.f32.mrb[49].mxu1 }
 0x585   :  { %v3256_v62 = vpack.i.bf16 %v3073_v25, %v1640_v59  ;;  %v3074_v46 = vpop.f32.mrb[50].mxu1 }
 0x586   :  { %v1643_v40 = vpop.f32.mrb[51].mxu1 }
 0x587   :  { %v3258_v22 = vpack.i.bf16 %v3074_v46, %v1643_v40  ;;  %3257 = vxpose.xlu1.b32.start [1/2] (short) (narrow) %v3256_v62, 8  ;;  %v3319_v62 = vld [vmem:[#allocation2 + $0x20] sm:$0xff] }
 0x588   :  { %v1996_v46 = vmul.f32 %v3319_v62, %v3549_v37  ;;  %v2000_v37 = vmul.f32 %v3564_v43, %v3506_v26  ;;  %v2006_v26 = vmul.f32 %v3320_v41, %v3589_v53 }
 0x58b   :  { %3259 = vxpose.xlu1.b32.end [2/2] (short) (narrow) %v3258_v22, 8  ;;  %v4063_v22 = vpack.c.bf16 %v3480_v15, %v3473_v12  ;;  %v2002_v12 = vmul.f32 %v3575_v47, %v3518_v30  ;;  %v4064_v15 = vld [vmem:[#allocation11_spill] sm:$0xff]  ;;  %v4065_v30 = vld [vmem:[#allocation12_spill] sm:$0xff] }
 0x58c   :  { %v2003_v23 = vmul.f32 %v3577_v48, %v4064_v15  ;;  %v4066_v48 = vld [vmem:[#allocation13_spill] sm:$0xff] }
 0x58d   :  { %v2538_v14 = vmul.f32 %v4066_v48, %v4066_v48  ;;  %v4077_v48 = vld [vmem:[#allocation28_spill] sm:$0xff] }
 0x58e   :  { %v2013_v24 = vpack.c.bf16 %v2003_v23, %v2002_v12 }
 0x5ef   :  { %v3233_v31 = vpop.trf.xlu0 }
 0x5f0   :  { %v3237_v57 = vunpack.i.h.bf16 %v3233_v31  ;;  %v3234_v21 = vunpack.i.l.bf16 %v3233_v31  ;;  %v2524_v31 = vmul.f32 0.25, %v4067_v9 }
 0x5f2   :  { %v1911_v61 = vpack.c.bf16 %v3237_v57, %v3234_v21  ;;  %v4068_v21 = vld [vmem:[#allocation15_spill] sm:$0xff] }
 0x5f4   :  { %3077 = vmatprep.mubr.msk.bf16.mxu0 %vm97_vm0, %v1911_v61 }
 0x5f7   :  { %v3242_v33 = vpop.trf.xlu1 }
 0x5f8   :  { %v3246_v1 = vunpack.i.h.bf16 %v3242_v33  ;;  %v3243_v5 = vunpack.i.l.bf16 %v3242_v33 }
 0x5fa   :  { %v1912_v63 = vpack.c.bf16 %v3246_v1, %v3243_v5  ;;  %v4070_v5 = vld [vmem:[#allocation17_spill] sm:$0xff] }
 0x5fc   :  { %3078 = vmatmul.mubr.msk.bf16.vlgmr.msra.gmra.mrb[36].mxu0 %vm97_vm0, %v1912_v63  ;;  %v2539_v63 = vmul.f32 %v4070_v5, %v4070_v5 }
 0x5fd   :  { %3086 = vmatpush3.bf16.msra.mxu0 %v3451_v0  ;;  %v1997_v0 = vmul.f32 %v3551_v38, %v3475_v13  ;;  %v2001_v13 = vmul.f32 %v3566_v44, %v3509_v27  ;;  %v2011_v38 = vpack.c.bf16 %v1999_v8, %v1998_v55  ;;  %v2007_v27 = vmul.f32 %v3321_v42, %v3591_v54 }
 0x5fe   :  { %v2540_v44 = vmul.f32 %v4065_v30, %v4065_v30  ;;  %v2541_v54 = vmul.f32 %v4068_v21, %v4068_v21 }
 0x5ff   :  { %v3251_v2 = vpop.trf.xlu0  ;;  %v2010_v40 = vpack.c.bf16 %v1997_v0, %v1996_v46  ;;  %v2015_v43 = vpack.c.bf16 %v2007_v27, %v2006_v26  ;;  %v4076_v27 = vld [vmem:[#allocation27_spill] sm:$0xff] }
 0x600   :  { %v3255_v17 = vunpack.i.h.bf16 %v3251_v2  ;;  %v3252_v7 = vunpack.i.l.bf16 %v3251_v2  ;;  %v4071_v2 = vsub.f32 %v3822_v56, %v3818_v52 }
 0x602   :  { %v1913_v49 = vpack.c.bf16 %v3255_v17, %v3252_v7  ;;  %v2525_v17 = vmul.f32 0.25, %v4071_v2 }
 0x604   :  { %3081 = vmatprep.mubr.msk.bf16.mxu0 %vm97_vm0, %v1913_v49  ;;  %v4072_v49 = vsub.f32 %v3830_v39, %v3826_v10  ;;  %v4074_v10 = vld [vmem:[#allocation24_spill] sm:$0xff] }
 0x605   :  { %v2666_v39 = vadd.f32 0.0001, %v4074_v10  ;;  %v4084_v10 = vld [vmem:[#allocation39_spill] sm:$0xff] }
 0x607   :  { %v3260_v18 = vpop.trf.xlu1 }
 0x608   :  { %v3264_v50 = vunpack.i.h.bf16 %v3260_v18  ;;  %v3261_v25 = vunpack.i.l.bf16 %v3260_v18  ;;  %v2523_v18 = vmul.f32 0.25, %v4072_v49  ;;  %v4083_v49 = vsub.f32 %v3862_v51, %v3858_v20 }
 0x60a   :  { %v1914_v59 = vpack.c.bf16 %v3264_v50, %v3261_v25  ;;  %v2531_v52 = vmax.f32 %v2523_v18, 0.0  ;;  %v2527_v18 = vmul.f32 0.25, %v4083_v49 }
 0x60c   :  { %3082 = vmatmul.mubr.msk.bf16.gmra.mrb[40].mxu0 %vm97_vm0, %v1914_v59 }
 0x60d   :  { %3087 = vmatprep.mubr.msk.bf16.mxu0 %vm97_vm0, %v2008_v29  ;;  %v2012_v29 = vpack.c.bf16 %v2001_v13, %v2000_v37  ;;  %v4073_v37 = vld [vmem:[#allocation22_spill] sm:$0xff] }
 0x60e   :  { %v2668_v13 = vadd.f32 0.0001, %v4073_v37 }
 0x614   :  { %3088 = vmatmul.mubr.msk.bf16.vlgmr.msra.gmra.mrb[44].mxu0 %vm97_vm0, %v4063_v22 }
 0x615   :  { %3091 = vmatprep.mubr.msk.bf16.mxu0 %vm97_vm0, %v2010_v40  ;;  %v2533_v40 = vmax.f32 %v2525_v17, 0.0  ;;  %v2543_v17 = vmul.f32 %v3728_v28, %v3728_v28 }
 0x61c   :  { %3092 = vmatmul.mubr.msk.bf16.gmra.mrb[48].mxu0 %vm97_vm0, %v2011_v38 }
 0x61d   :  { %3095 = vmatprep.mubr.msk.bf16.mxu0 %vm97_vm0, %v2012_v29 }
 0x624   :  { %3096 = vmatmul.mubr.msk.bf16.gmra.mrb[52].mxu0 %vm97_vm0, %v2013_v24  ;;  %v4075_v24 = vld [vmem:[#allocation26_spill] sm:$0xff] }
 0x625   :  { %3099 = vmatprep.mubr.msk.bf16.mxu0 %vm97_vm0, %v2014_v19  ;;  %v4069_v19 = vsub.f32 %v3814_v45, %v3810_v16  ;;  %v2532_v16 = vmax.f32 %v2524_v31, 0.0  ;;  %v2669_v41 = vadd.f32 0.0001, %v4075_v24  ;;  %v4078_v31 = vld [vmem:[#allocation29_spill] sm:$0xff] }
 0x627   :  { %v2522_v61 = vmul.f32 0.25, %v4069_v19 }
 0x629   :  { %v2530_v62 = vmax.f32 %v2522_v61, 0.0  ;;  %v4080_v61 = vld [vmem:[#allocation31_spill] sm:$0xff] }
 0x62c   :  { %3100 = vmatmul.mubr.msk.bf16.gmra.mrb[56].mxu0 %vm97_vm0, %v2015_v43  ;;  %v2667_v43 = vadd.f32 0.0001, %v4076_v27 }
 0x6cf   :  { %v3079_v47 = vpop.f32.mrb[36].mxu0 }
 0x6d0   :  { %v2548_v53 = vsub.f32 %v3079_v47, %v2540_v44  ;;  %v1961_v57 = vpop.f32.mrb[37].mxu0 }
 0x6d1   :  { %v2546_v33 = vsub.f32 %v1961_v57, %v2538_v14  ;;  %v3080_v1 = vpop.f32.mrb[38].mxu0  ;;  %v2544_v14 = vmul.f32 %v4077_v48, %v4077_v48  ;;  %v4079_v57 = vsub.f32 %v3838_v4, %v3836_v58 }
 0x6d2   :  { %v2556_v34 = vmul.f32 0.25, %v2548_v53  ;;  %v2549_v32 = vsub.f32 %v3080_v1, %v2541_v54  ;;  %v1964_v7 = vpop.f32.mrb[39].mxu0  ;;  %v2542_v53 = vmul.f32 %v4078_v31, %v4078_v31  ;;  %v4081_v1 = vsub.f32 %v3846_v35, %v3842_v6 }
 0x6d3   :  { %v2554_v50 = vmul.f32 0.25, %v2546_v33  ;;  %v2547_v25 = vsub.f32 %v1964_v7, %v2539_v63  ;;  %v2528_v21 = vmul.f32 0.25, %v4079_v57  ;;  %v2545_v33 = vmul.f32 %v4080_v61, %v4080_v61 }
 0x6d4   :  { %v2564_v45 = vmax.f32 %v2556_v34, 0.0  ;;  %v2557_v59 = vmul.f32 0.25, %v2549_v32  ;;  %v2526_v5 = vmul.f32 0.25, %v4081_v1  ;;  %v4082_v34 = vsub.f32 %v3854_v60, %v3850_v11 }
 0x6d5   :  { %v2562_v46 = vmax.f32 %v2554_v50, 0.0  ;;  %v2555_v0 = vmul.f32 0.25, %v2547_v25  ;;  %v2536_v6 = vmax.f32 %v2528_v21, 0.0  ;;  %v2535_v11 = vmax.f32 %v2527_v18, 0.0 }
 0x6d6   :  { %v2676_v22 = vadd.f32 %v2564_v45, %v2532_v16  ;;  %v2565_v55 = vmax.f32 %v2557_v59, 0.0  ;;  %v2529_v32 = vmul.f32 0.25, %v4082_v34  ;;  %v2534_v45 = vmax.f32 %v2526_v5, 0.0 }
 0x6d7   :  { %v2674_v56 = vadd.f32 %v2562_v46, %v2530_v62  ;;  %v2563_v8 = vmax.f32 %v2555_v0, 0.0 }
 0x6d8   :  { %v2684_v38 = vadd.f32 0.0009, %v2676_v22  ;;  %v2677_v29 = vadd.f32 %v2565_v55, %v2533_v40  ;;  %v2537_v28 = vmax.f32 %v2529_v32, 0.0  ;;  %v2672_v55 = vadd.f32 0.0001, %v3743_v36 }
 0x6d9   :  { %v2682_v12 = vadd.f32 0.0009, %v2674_v56  ;;  %v2675_v15 = vadd.f32 %v2563_v8, %v2531_v52  ;;  %v2670_v56 = vadd.f32 0.0001, %v3747_v3 }
 0x6da   :  { %v3929_v23 = vmul.f32 %v2684_v38, %v2668_v13  ;;  %v2685_v26 = vadd.f32 0.0009, %v2677_v29 }
 0x6db   :  { %v3932_v42 = vmul.f32 %v2682_v12, %v2666_v39  ;;  %v2683_v30 = vadd.f32 0.0009, %v2675_v15  ;;  %v2673_v39 = vadd.f32 0.0001, %v4084_v10 }
 0x6dc   :  { %v3935_v44 = vmul.f32 %v2685_v26, %v2669_v41  ;;  %v4085_v41 = vld [vmem:[#allocation40_spill] sm:$0xff]  ;;  %3303 = vrcp.f32 %v3929_v23 }
 0x6dd   :  { %v3937_v47 = vmul.f32 %v2683_v30, %v2667_v43  ;;  %v2671_v26 = vadd.f32 0.0001, %v4085_v41  ;;  %3305 = vrcp.f32 %v3932_v42 }
 0x6de   :  { %3307 = vrcp.f32 %v3935_v44 }
 0x6df   :  { %v3083_v9 = vpop.f32.mrb[40].mxu0  ;;  %3309 = vrcp.f32 %v3937_v47 }
 0x6e0   :  { %v2552_v54 = vsub.f32 %v3083_v9, %v2544_v14  ;;  %v1977_v19 = vpop.f32.mrb[41].mxu0 }
 0x6e1   :  { %v2550_v63 = vsub.f32 %v1977_v19, %v2542_v53  ;;  %v3084_v2 = vpop.f32.mrb[42].mxu0 }
 0x6e2   :  { %v2560_v58 = vmul.f32 0.25, %v2552_v54  ;;  %v2553_v4 = vsub.f32 %v3084_v2, %v2545_v33  ;;  %v1980_v7 = vpop.f32.mrb[43].mxu0 }
 0x6e3   :  { %v2558_v50 = vmul.f32 0.25, %v2550_v63  ;;  %v2551_v25 = vsub.f32 %v1980_v7, %v2543_v17 }
 0x6e4   :  { %v2568_v35 = vmax.f32 %v2560_v58, 0.0  ;;  %v2561_v16 = vmul.f32 0.25, %v2553_v4 }
 0x6e5   :  { %v2566_v59 = vmax.f32 %v2558_v50, 0.0  ;;  %v2559_v62 = vmul.f32 0.25, %v2551_v25 }
 0x6e6   :  { %v2680_v46 = vadd.f32 %v2568_v35, %v2536_v6  ;;  %v2569_v0 = vmax.f32 %v2561_v16, 0.0 }
 0x6e7   :  { %v2678_v60 = vadd.f32 %v2566_v59, %v2534_v45  ;;  %v2567_v40 = vmax.f32 %v2559_v62, 0.0  ;;  %v3089_v22 = vpop.f32.mrb[44].mxu0 }
 0x6e8   :  { %v2688_v52 = vadd.f32 0.0009, %v2680_v46  ;;  %v2681_v20 = vadd.f32 %v2569_v0, %v2537_v28  ;;  %v2074_v51 = vpop.f32.mrb[45].mxu0 }
 0x6e9   :  { %v2686_v8 = vadd.f32 0.0009, %v2678_v60  ;;  %v2679_v37 = vadd.f32 %v2567_v40, %v2535_v11  ;;  %v3265_v13 = vpack.i.bf16 %v3089_v22, %v2074_v51  ;;  %v3090_v38 = vpop.f32.mrb[46].mxu0  ;;  %v4086_v11 = vld [vmem:[#allocation14_spill] sm:$0xff]  ;;  %v4087_v22 = vld [vmem:[#allocation16_spill] sm:$0xff] }
 0x6ea   :  { %v3961_v29 = vmul.f32 %v2688_v52, %v2672_v55  ;;  %v2689_v12 = vadd.f32 0.0009, %v2681_v20  ;;  %v2077_v15 = vpop.f32.mrb[47].mxu0  ;;  %v4088_v51 = vld [vmem:[#allocation18_spill] sm:$0xff] }
 0x6eb   :  { %v3964_v24 = vmul.f32 %v2686_v8, %v2670_v56  ;;  %v2687_v36 = vadd.f32 0.0009, %v2679_v37  ;;  %v3267_v27 = vpack.i.bf16 %v3090_v38, %v2077_v15  ;;  %3266 = vxpose.xlu0.b32.start [1/2] (short) (narrow) %v3265_v13, 8  ;;  %v4089_v13 = vld [vmem:[#allocation19_spill] sm:$0xff] }
 0x6ec   :  { %v3967_v43 = vmul.f32 %v2689_v12, %v2673_v39  ;;  %v4090_v12 = vld [vmem:[#allocation20_spill] sm:$0xff]  ;;  %3311 = vrcp.f32 %v3961_v29 }
 0x6ed   :  { %v3969_v3 = vmul.f32 %v2687_v36, %v2671_v26  ;;  %v2612_v15 = vadd.f32 0.0001, %v4090_v12  ;;  %v4091_v26 = vld [vmem:[#allocation21_spill] sm:$0xff]  ;;  %3313 = vrcp.f32 %v3964_v24 }
 0x6ee   :  { %v2610_v36 = vadd.f32 0.0001, %v4091_v26  ;;  %3315 = vrcp.f32 %v3967_v43  ;;  %v4098_v43 = vld [vmem:[#allocation35_spill] sm:$0xff] }
 0x6ef   :  { %3268 = vxpose.xlu0.b32.end [2/2] (short) (narrow) %v3267_v27, 8  ;;  %v3093_v30 = vpop.f32.mrb[48].mxu0  ;;  %3317 = vrcp.f32 %v3969_v3 }
 0x6f0   :  { %v2090_v48 = vpop.f32.mrb[49].mxu0 }
 0x6f1   :  { %v3274_v14 = vpack.i.bf16 %v3093_v30, %v2090_v48  ;;  %v3094_v9 = vpop.f32.mrb[50].mxu0  ;;  %v4092_v48 = vld [vmem:[#allocation23_spill] sm:$0xff] }
 0x6f2   :  { %v2093_v31 = vpop.f32.mrb[51].mxu0 }
 0x6f3   :  { %v3276_v53 = vpack.i.bf16 %v3094_v9, %v2093_v31  ;;  %3275 = vxpose.xlu1.b32.start [1/2] (short) (narrow) %v3274_v14, 8  ;;  %v2613_v14 = vadd.f32 0.0001, %v4092_v48  ;;  %v3304_v31 = vpop.eup %3303 }
 0x6f7   :  { %3277 = vxpose.xlu1.b32.end [2/2] (short) (narrow) %v3276_v53, 8  ;;  %v3097_v57 = vpop.f32.mrb[52].mxu0 }
 0x6f8   :  { %v2106_v21 = vpop.f32.mrb[53].mxu0 }
 0x6f9   :  { %v3283_v54 = vpack.i.bf16 %v3097_v57, %v2106_v21  ;;  %v3098_v19 = vpop.f32.mrb[54].mxu0  ;;  %v4093_v57 = vld [vmem:[#allocation25_spill] sm:$0xff] }
 0x6fa   :  { %v2109_v61 = vpop.f32.mrb[55].mxu0  ;;  %v2611_v21 = vadd.f32 0.0001, %v4093_v57  ;;  %v2747_v57 = vlaneseq }
 0x6fb   :  { %v3285_v33 = vpack.i.bf16 %v3098_v19, %v2109_v61  ;;  %3284 = vxpose.xlu0.b32.start [1/2] (short) (narrow) %v3283_v54, 8  ;;  %v3306_v19 = vpop.eup %3305 }
 0x6ff   :  { %3286 = vxpose.xlu0.b32.end [2/2] (short) (narrow) %v3285_v33, 8  ;;  %v3101_v1 = vpop.f32.mrb[56].mxu0 }
 0x700   :  { %v2122_v5 = vpop.f32.mrb[57].mxu0 }
 0x701   :  { %v3292_v63 = vpack.i.bf16 %v3101_v1, %v2122_v5  ;;  %v3102_v2 = vpop.f32.mrb[58].mxu0  ;;  %v3308_v1 = vpop.eup %3307 }
 0x702   :  { %v2125_v17 = vpop.f32.mrb[59].mxu0 }
 0x703   :  { %v3294_v34 = vpack.i.bf16 %v3102_v2, %v2125_v17  ;;  %3293 = vxpose.xlu1.b32.start [1/2] (short) (narrow) %v3292_v63, 8  ;;  %v3310_v2 = vpop.eup %3309 }
 0x707   :  { %3295 = vxpose.xlu1.b32.end [2/2] (short) (narrow) %v3294_v34, 8 }
 0x76b   :  { %v3269_v32 = vpop.trf.xlu0 }
 0x76c   :  { %v3273_v58 = vunpack.i.h.bf16 %v3269_v32  ;;  %v3270_v4 = vunpack.i.l.bf16 %v3269_v32 }
 0x76e   :  { %v2393_v7 = vpack.c.bf16 %v3273_v58, %v3270_v4 }
 0x770   :  { %3105 = vmatprep.mubr.msk.bf16.mxu1 %vm97_vm0, %v2393_v7  ;;  %v4094_v7 = vld [vmem:[#allocation30_spill] sm:$0xff] }
 0x773   :  { %v3278_v49 = vpop.trf.xlu1 }
 0x774   :  { %v3282_v18 = vunpack.i.h.bf16 %v3278_v49  ;;  %v3279_v50 = vunpack.i.l.bf16 %v3278_v49 }
 0x776   :  { %v2394_v25 = vpack.c.bf16 %v3282_v18, %v3279_v50 }
 0x778   :  { %3106 = vmatmul.mubr.msk.bf16.vlgmr.msra.gmra.mrb[52].mxu1 %vm97_vm0, %v2394_v25  ;;  %v4095_v25 = vld [vmem:[#allocation32_spill] sm:$0xff] }
 0x77b   :  { %v3287_v6 = vpop.trf.xlu0 }
 0x77c   :  { %v3291_v35 = vunpack.i.h.bf16 %v3287_v6  ;;  %v3288_v16 = vunpack.i.l.bf16 %v3287_v6 }
 0x77e   :  { %v2395_v45 = vpack.c.bf16 %v3291_v35, %v3288_v16 }
 0x780   :  { %3109 = vmatprep.mubr.msk.bf16.mxu1 %vm97_vm0, %v2395_v45  ;;  %v4096_v45 = vld [vmem:[#allocation33_spill] sm:$0xff] }
 0x783   :  { %v3296_v59 = vpop.trf.xlu1 }
 0x784   :  { %v3300_v62 = vunpack.i.h.bf16 %v3296_v59  ;;  %v3297_v28 = vunpack.i.l.bf16 %v3296_v59 }
 0x786   :  { %v2396_v46 = vpack.c.bf16 %v3300_v62, %v3297_v28  ;;  %v4097_v28 = vld [vmem:[#allocation34_spill] sm:$0xff] }
 0x788   :  { %3110 = vmatmul.mubr.msk.bf16.gmra.mrb[56].mxu1 %vm97_vm0, %v2396_v46 }
 0x84b   :  { %v3107_v0 = vpop.f32.mrb[52].mxu1 }
 0x84c   :  { %v2580_v60 = vsub.f32 %v3107_v0, %v4086_v11  ;;  %v2443_v40 = vpop.f32.mrb[53].mxu1 }
 0x84d   :  { %v2578_v55 = vsub.f32 %v2443_v40, %v4087_v22  ;;  %v3108_v52 = vpop.f32.mrb[54].mxu1  ;;  %v2616_v22 = vadd.f32 0.0001, %v4098_v43 }
 0x84e   :  { %v2588_v20 = vmul.f32 0.25, %v2580_v60  ;;  %v2581_v56 = vsub.f32 %v3108_v52, %v4088_v51  ;;  %v2446_v8 = vpop.f32.mrb[55].mxu1 }
 0x84f   :  { %v2586_v37 = vmul.f32 0.25, %v2578_v55  ;;  %v2579_v23 = vsub.f32 %v2446_v8, %v4089_v13 }
 0x850   :  { %v2620_v38 = vmul.f32 2.0, %v2588_v20  ;;  %v2589_v10 = vmul.f32 0.25, %v2581_v56  ;;  %v4099_v20 = vld [vmem:[#allocation36_spill] sm:$0xff] }
 0x851   :  { %v2618_v42 = vmul.f32 2.0, %v2586_v37  ;;  %v2587_v39 = vmul.f32 0.25, %v2579_v23  ;;  %v2614_v3 = vadd.f32 0.0001, %v4099_v20  ;;  %v4100_v37 = vld [vmem:[#allocation37_spill] sm:$0xff] }
 0x852   :  { %v2628_v41 = vadd.f32 0.0009, %v2620_v38  ;;  %v2621_v44 = vmul.f32 2.0, %v2589_v10  ;;  %v2617_v13 = vadd.f32 0.0001, %v4100_v37  ;;  %v3312_v38 = vpop.eup %3311 }
 0x853   :  { %v2626_v27 = vadd.f32 0.0009, %v2618_v42  ;;  %v2619_v30 = vmul.f32 2.0, %v2587_v39  ;;  %v4101_v42 = vld [vmem:[#allocation38_spill] sm:$0xff] }
 0x854   :  { %v2636_v47 = vmul.f32 %v2628_v41, %v2612_v15  ;;  %v2629_v9 = vadd.f32 0.0009, %v2621_v44  ;;  %v2615_v39 = vadd.f32 0.0001, %v4101_v42  ;;  %v3314_v15 = vpop.eup %3313 }
 0x855   :  { %v2634_v53 = vmul.f32 %v2626_v27, %v2610_v36  ;;  %v2627_v54 = vadd.f32 0.0009, %v2619_v30  ;;  %v3316_v26 = vpop.eup %3315 }
 0x856   :  { %v2637_v61 = vmul.f32 %v2629_v9, %v2613_v14  ;;  %v2708_v33 = vmul.f32 %v3304_v31, %v2636_v47  ;;  %v3318_v30 = vpop.eup %3317 }
 0x857   :  { %v2635_v5 = vmul.f32 %v2627_v54, %v2611_v21  ;;  %v2706_v63 = vmul.f32 %v3306_v19, %v2634_v53  ;;  %v2748_v54 = vand.u32 127, %v2747_v57  ;;  %v2750_v19 = vshrl.u32 %v2747_v57, 7 }
 0x858   :  { %v2721_v17 = vsel %vm2714_vm1, %v2708_v33, 0.0  ;;  %v2709_v34 = vmul.f32 %v3308_v1, %v2637_v61 }
 0x859   :  { %2722 = vadd.xlane.f32.xlu1 %v2721_v17  ;;  %v2715_v32 = vsel %vm2714_vm1, %v2706_v63, 0.0  ;;  %v2707_v58 = vmul.f32 %v3310_v2, %v2635_v5  ;;  %v2751_v33 = vsub.s32 %v2748_v54, %v2750_v19 }
 0x85a   :  { %2716 = vadd.xlane.f32.xlu0 %v2715_v32  ;;  %v2724_v50 = vsel %vm2714_vm1, %v2709_v34, 0.0 }
 0x85b   :  { %v3111_v4 = vpop.f32.mrb[56].mxu1  ;;  %v2718_v11 = vsel %vm2714_vm1, %v2707_v58, 0.0 }
 0x85c   :  { %v2584_v49 = vsub.f32 %v3111_v4, %v4094_v7  ;;  %v2459_v18 = vpop.f32.mrb[57].mxu1 }
 0x85d   :  { %v2582_v6 = vsub.f32 %v2459_v18, %v4095_v25  ;;  %2725 = vadd.xlane.f32.xlu1 %v2724_v50  ;;  %v3112_v35 = vpop.f32.mrb[58].mxu1 }
 0x85e   :  { %v2592_v16 = vmul.f32 0.25, %v2584_v49  ;;  %v2585_v59 = vsub.f32 %v3112_v35, %v4096_v45  ;;  %v2462_v29 = vpop.f32.mrb[59].mxu1 }
 0x85f   :  { %v2590_v62 = vmul.f32 0.25, %v2582_v6  ;;  %v2583_v24 = vsub.f32 %v2462_v29, %v4097_v28 }
 0x860   :  { %v2624_v46 = vmul.f32 2.0, %v2592_v16  ;;  %v2593_v0 = vmul.f32 0.25, %v2585_v59 }
 0x861   :  { %v2622_v60 = vmul.f32 2.0, %v2590_v62  ;;  %v2591_v40 = vmul.f32 0.25, %v2583_v24  ;;  %2719 = vadd.xlane.f32.xlu1 %v2718_v11 }
 0x862   :  { %v2632_v55 = vadd.f32 0.0009, %v2624_v46  ;;  %v2625_v52 = vmul.f32 2.0, %v2593_v0 }
 0x863   :  { %v2630_v51 = vadd.f32 0.0009, %v2622_v60  ;;  %v2623_v56 = vmul.f32 2.0, %v2591_v40 }
 0x864   :  { %v2640_v8 = vmul.f32 %v2632_v55, %v2616_v22  ;;  %v2633_v23 = vadd.f32 0.0009, %v2625_v52 }
 0x865   :  { %v2638_v10 = vmul.f32 %v2630_v51, %v2614_v3  ;;  %v2631_v12 = vadd.f32 0.0009, %v2623_v56 }
 0x866   :  { %v2641_v41 = vmul.f32 %v2633_v23, %v2617_v13  ;;  %v2712_v44 = vmul.f32 %v3312_v38, %v2640_v8 }
 0x867   :  { %v2639_v36 = vmul.f32 %v2631_v12, %v2615_v39  ;;  %v2710_v27 = vmul.f32 %v3314_v15, %v2638_v10 }
 0x868   :  { %v2713_v47 = vmul.f32 %v3316_v26, %v2641_v41  ;;  %v2733_v31 = vsel %vm2714_vm1, %v2712_v44, 0.0 }
 0x869   :  { %v2727_v48 = vsel %vm2714_vm1, %v2710_v27, 0.0  ;;  %v2711_v14 = vmul.f32 %v3318_v30, %v2639_v36 }
 0x86a   :  { %2728 = vadd.xlane.f32.xlu0 %v2727_v48  ;;  %v2736_v53 = vsel %vm2714_vm1, %v2713_v47, 0.0 }
 0x86b   :  { %v2730_v9 = vsel %vm2714_vm1, %v2711_v14, 0.0 }
 0x86c   :  { %2731 = vadd.xlane.f32.xlu1 %v2730_v9 }
 0x86e   :  { %2734 = vadd.xlane.f32.xlu0 %v2733_v31 }
 0x870   :  { %2737 = vadd.xlane.f32.xlu1 %v2736_v53 }
 0x8e6   :  { %v2723_v21 = vpop.xlane.xlu1 %2722 }
 0x8e7   :  { %v2717_v1 = vpop.xlane.xlu0 %2716  ;;  %v2760_v34 = vrot.slane %v2723_v21, %v2751_v33 }
 0x8e8   :  { %v2752_v2 = vrot.slane %v2717_v1, %v2751_v33 }
 0x8ea   :  { %v2726_v61 = vpop.xlane.xlu1 %2725 }
 0x8eb   :  { %v2764_v58 = vrot.slane %v2726_v61, %v2751_v33 }
 0x8ee   :  { %v2720_v5 = vpop.xlane.xlu1 %2719 }
 0x8ef   :  { %v2756_v63 = vrot.slane %v2720_v5, %v2751_v33 }
 0x8f1   :  { %v2782_v17 = vsel %vm2781_vm2, %v2756_v63, %v2752_v2 }
 0x8f2   :  { %v2784_v32 = vsel %vm2783_vm3, %v2760_v34, %v2782_v17 }
 0x8f3   :  { %v2786_v49 = vsel %vm2785_vm4, %v2764_v58, %v2784_v32 }
 0x8f7   :  { %v2729_v4 = vpop.xlane.xlu0 %2728 }
 0x8f8   :  { %v2768_v7 = vrot.slane %v2729_v4, %v2751_v33 }
 0x8f9   :  { %v2732_v18 = vpop.xlane.xlu1 %2731 }
 0x8fa   :  { %v2788_v50 = vsel %vm2787_vm5, %v2768_v7, %v2786_v49  ;;  %v2772_v25 = vrot.slane %v2732_v18, %v2751_v33 }
 0x8fb   :  { %v2735_v6 = vpop.xlane.xlu0 %2734 }
 0x8fc   :  { %v2790_v35 = vsel %vm2789_vm6, %v2772_v25, %v2788_v50  ;;  %v2776_v16 = vrot.slane %v2735_v6, %v2751_v33 }
 0x8fd   :  { %v2738_v45 = vpop.xlane.xlu1 %2737 }
 0x8fe   :  { %v2780_v59 = vrot.slane %v2738_v45, %v2751_v33  ;;  %v2792_v29 = vsel %vm2791_vm7, %v2776_v16, %v2790_v35 }
 0x900   :  { %v2794_v62 = vsel %vm2793_vm8, %v2780_v59, %v2792_v29 }
 0x901   :  { %v2796_v28 = vsel %vm2714_vm1, %v2794_v62, 0.0 }
 0x902   :  { %2797 = vadd.xlane.f32.xlu0 %v2796_v28 }
 0x98f   :  { %v2798_v24 = vpop.xlane.xlu0 %2797 }
 0x990   :  { %v2799_v46 = vmul.f32 0.027777778, %v2798_v24 }
 0x992   :  { %v2800_v0 = vmax.f32 %v2799_v46, 0.0 }
 0x994   :  { %v2805_v11 = vrot.slane %v2800_v0, %v2751_v33 }
 0x996   :  { %2808 = vst.msk [vmem:[#allocation7] sm:$0x1] %vm2807_vm9, %v2805_v11 }
 0x997   :  { %3377 = shalt.err (!%p3374_p6)
}
 0x998   :  { %s3378_s21 = scalar_lea.hbm %s4024_s4, 16 }
 0x999   :  { %p3379_p7 = scmp.ne.s32.totalorder %s4024_s4, %s3378_s21  ;;  %p3382_p8 = scmp.lt.u32.totalorder %s3378_s21, %s4024_s4 }
 0x99b   :  { %p3384_p9 = pnand %p3382_p8, %p3379_p7 }
 0x99d   :  { %3387 = shalt.err (!%p3384_p9)
}
 0x99e   :  { %2818 = dma.vmem_to_hbm [thread:$0]  %s2816_s16, 16, %s4024_s4, [#allocation4]  }
 0x99f   :  { %3392 = dma.done.wait [#allocation4], 16  }
 0x9a0   :  { %3393 = vsyncadd [#allocation4], 4294967280 }
 0x9a1   :  { %2822 = vsyncpa [#allocation3], 1 }
 0x9a2   :  { %2823 = vsyncpa [#allocation6], 1 }
 0x9a3   :  { %2824 = vsyncpa [#allocation4], 1 }

</bundles_post_ra>
